<compile_context>
chip_gen: v7x
topology: tpu7x:2x2x1
jax: 0.10.0
libtpu: 0.0.40
codegen_flags: <defaults>
</compile_context>

<pallas_src>
import functools

import jax
import jax.numpy as jnp
from jax import lax
from jax.experimental import pallas as pl
from jax.experimental.pallas import tpu as pltpu


SPAD1 = 256   # per-batch lane padding of pooled conv1 output (14*14 = 196 valid)
SPAD2 = 128   # per-batch lane padding of pooled conv2 output (5*5  =  25 valid)


# ---------------------------------------------------------------------------
# Pallas kernels
# ---------------------------------------------------------------------------
def _conv_relu_pool_kernel(p_ref, w_ref, b_ref, o_ref):
    """conv (one wide matmul) + 2x2 max-pool + bias + ReLU.

    p_ref: [K, 4*S] bf16  (4 pool-offset slabs of S lanes each, S = out lanes)
    w_ref: [Cout, K] bf16   b_ref: [Cout, 1] f32   o_ref: [Cout, S] bf16
    """
    slab = o_ref.shape[-1]
    a = jnp.dot(w_ref[...], p_ref[...], preferred_element_type=jnp.float32)
    m = jnp.maximum(jnp.maximum(a[:, 0 * slab:1 * slab], a[:, 1 * slab:2 * slab]),
                    jnp.maximum(a[:, 2 * slab:3 * slab], a[:, 3 * slab:4 * slab]))
    o_ref[...] = jnp.maximum(m + b_ref[...], 0.0).astype(o_ref.dtype)


def _conv_pool_fc_kernel(p_ref, w2_ref, b2_ref, fw1_ref, fb1_ref, fw2_ref,
                         fb2_ref, fw3_ref, fb3_ref, o_ref, *, batch, spad):
    """conv2 + pool + bias + ReLU + flatten + fc1 + fc2 + fc3.

    p_ref:   [150, 4*batch*spad] bf16   w2_ref: [16, 150] bf16  b2_ref: [16,1] f32
    fw1_ref: [16*spad, 120] bf16 (zero-padded so lanes s >= 25 are ignored)
    fw2_ref: [120, 84] bf16   fw3_ref: [84, C] bf16   biases: [1, N] f32
    o_ref:   [batch, C] f32
    """
    slab = batch * spad
    a = jnp.dot(w2_ref[...], p_ref[...], preferred_element_type=jnp.float32)
    m = jnp.maximum(jnp.maximum(a[:, 0 * slab:1 * slab], a[:, 1 * slab:2 * slab]),
                    jnp.maximum(a[:, 2 * slab:3 * slab], a[:, 3 * slab:4 * slab]))
    pooled = jnp.maximum(m + b2_ref[...], 0.0)            # [16, batch*spad] f32
    n_ch = pooled.shape[0]                                 # 16

    # Flatten to [batch, 16*spad] in torch's (c, s) order using 128-aligned
    # slices + concatenate (no in-kernel reshape/transpose).  Pad lanes carry
    # junk but fw1 is exactly zero there, so the single fc1 matmul is exact.
    rows = []
    for b in range(batch):
        blk = pooled[:, b * spad:(b + 1) * spad]           # [16, spad], aligned
        rows.append(jnp.concatenate([blk[c:c + 1, :] for c in range(n_ch)],
                                    axis=1))               # [1, 16*spad]
    x = jnp.concatenate(rows, axis=0).astype(jnp.bfloat16)  # [batch, 16*spad]

    h = jnp.dot(x, fw1_ref[...], preferred_element_type=jnp.float32) + fb1_ref[...]
    h = jnp.maximum(h, 0.0).astype(jnp.bfloat16)            # [batch, 120]
    h = jnp.dot(h, fw2_ref[...], preferred_element_type=jnp.float32) + fb2_ref[...]
    h = jnp.maximum(h, 0.0).astype(jnp.bfloat16)            # [batch, 84]
    out = jnp.dot(h, fw3_ref[...], preferred_element_type=jnp.float32) + fb3_ref[...]
    o_ref[...] = out.astype(o_ref.dtype)


# ---------------------------------------------------------------------------
# Pallas wrappers (LeNet-sized: whole arrays in VMEM, no grid)
# ---------------------------------------------------------------------------
def _vmem_specs(n):
    return [pl.BlockSpec(memory_space=pltpu.MemorySpace.VMEM) for _ in range(n)]


def conv_relu_pool(patches, w, b, out_lanes):
    """patches: [K, 4*out_lanes] bf16, w: [Cout, K] bf16, b: [Cout, 1] f32."""
    return pl.pallas_call(
        _conv_relu_pool_kernel,
        out_shape=jax.ShapeDtypeStruct((w.shape[0], out_lanes), jnp.bfloat16),
        in_specs=_vmem_specs(3),
        out_specs=pl.BlockSpec(memory_space=pltpu.MemorySpace.VMEM),
    )(patches, w, b)


def conv_pool_fc_tail(patches, kp, *, batch, spad):
    """Fused conv2 + pool + fc1 + fc2 + fc3 -> [batch, num_classes] f32."""
    num_classes = kp["fw3"].shape[-1]
    args = (patches, kp["w2"], kp["b2"], kp["fw1"], kp["fb1"],
            kp["fw2"], kp["fb2"], kp["fw3"], kp["fb3"])
    return pl.pallas_call(
        functools.partial(_conv_pool_fc_kernel, batch=batch, spad=spad),
        out_shape=jax.ShapeDtypeStruct((batch, num_classes), jnp.float32),
        in_specs=_vmem_specs(len(args)),
        out_specs=pl.BlockSpec(memory_space=pltpu.MemorySpace.VMEM),
    )(*args)


# ---------------------------------------------------------------------------
# XLA layout glue: pool-aware transposed im2col (valid conv, stride 1)
# ---------------------------------------------------------------------------
def _pooled_conv_patches(x_cbhw, kh, kw, spatial_pad):
    """x_cbhw: [C, B, H, W] -> [C*kh*kw, 4*B*spatial_pad] bf16.

    Lane layout: [pool offset (py,px)][batch b][pooled spatial yp*Wp+xp,
    zero-padded to spatial_pad].  Rows ordered (c, i, j) to match
    w.reshape(Cout, C*kh*kw).  The 4 pool offsets form 128-aligned slabs so the
    kernels fuse max-pool as an elementwise max over lane slabs of one matmul.
    """
    C, B, H, W = x_cbhw.shape
    Ho, Wo = H - kh + 1, W - kw + 1
    Hp, Wp = Ho // 2, Wo // 2
    K = C * kh * kw
    taps = [x_cbhw[:, :, i:i + Ho, j:j + Wo] for i in range(kh) for j in range(kw)]
    p = jnp.stack(taps, axis=1).reshape(K, B, Ho, Wo)          # rows (c, i, j)
    slabs = []
    for py in (0, 1):
        for px in (0, 1):
            blk = p[:, :, py::2, px::2].reshape(K, B, Hp * Wp)
            blk = jnp.pad(blk, ((0, 0), (0, 0), (0, spatial_pad - Hp * Wp)))
            slabs.append(blk.reshape(K, B * spatial_pad))
    return jnp.concatenate(slabs, axis=1).astype(jnp.bfloat16)


# ---------------------------------------------------------------------------
# Forward pass
# ---------------------------------------------------------------------------
def net_forward(x, kp):
    """x: [B, 3, 32, 32] f32 -> logits [B, num_classes] f32."""
    B = x.shape[0]
    c1out = kp["w1"].shape[0]                                   # 6
    xc = jnp.transpose(x, (1, 0, 2, 3)).astype(jnp.bfloat16)    # [3, B, 32, 32]
    p1 = _pooled_conv_patches(xc, 5, 5, SPAD1)                  # [75, 4*B*256]
    c1 = conv_relu_pool(p1, kp["w1"], kp["b1"],
                        out_lanes=B * SPAD1)                    # [6, B*256] bf16
    h1 = (x.shape[2] - 4) // 2                                  # 14
    w1s = (x.shape[3] - 4) // 2                                 # 14
    c1g = (c1.reshape(c1out, B, SPAD1)[:, :, :h1 * w1s]
             .reshape(c1out, B, h1, w1s))                       # strip pad
    p2 = _pooled_conv_patches(c1g, 5, 5, SPAD2)                 # [150, 4*B*128]
    return conv_pool_fc_tail(p2, kp, batch=B, spad=SPAD2)       # [B, num_classes]


# ---------------------------------------------------------------------------
# Parameters
# ---------------------------------------------------------------------------
def init_params(key, num_classes=10):
    """Torch-layout parameters (Conv2d / Linear conventions)."""
    ks = jax.random.split(key, 10)
    mk = lambda k, shape, scale: scale * jax.random.normal(k, shape, jnp.float32)
    return {
        "conv1_w": mk(ks[0], (6, 3, 5, 5), 0.1),
        "conv1_b": mk(ks[1], (6,), 0.01),
        "conv2_w": mk(ks[2], (16, 6, 5, 5), 0.1),
        "conv2_b": mk(ks[3], (16,), 0.01),
        "fc1_w": mk(ks[4], (120, 400), 0.05),
        "fc1_b": mk(ks[5], (120,), 0.01),
        "fc2_w": mk(ks[6], (84, 120), 0.05),
        "fc2_b": mk(ks[7], (84,), 0.01),
        "fc3_w": mk(ks[8], (num_classes, 84), 0.05),
        "fc3_b": mk(ks[9], (num_classes,), 0.01),
    }


def prepare_params(p, spad2=SPAD2):
    """One-time relayout to kernel format: bf16 matmul operands, f32 biases."""
    bf, f32 = jnp.bfloat16, jnp.float32
    c2 = p["conv2_w"].shape[0]                      # 16
    n1 = p["fc1_w"].shape[0]                        # 120
    s2 = 25                                         # pooled conv2 spatial (5*5)
    # fc1: [120, 400] -> [400, 120] -> [16, 25, 120] (torch (c, y, x) flatten
    # order) -> zero-pad spatial to spad2 -> [16*spad2, 120].
    fw1 = p["fc1_w"].T.reshape(c2, s2, n1)
    fw1 = jnp.pad(fw1, ((0, 0), (0, spad2 - s2), (0, 0))).reshape(c2 * spad2, n1)
    return {
        "w1": p["conv1_w"].reshape(p["conv1_w"].shape[0], -1).astype(bf),  # [6, 75]
        "b1": p["conv1_b"].reshape(-1, 1).astype(f32),                     # [6, 1]
        "w2": p["conv2_w"].reshape(c2, -1).astype(bf),                     # [16, 150]
        "b2": p["conv2_b"].reshape(-1, 1).astype(f32),                     # [16, 1]
        "fw1": fw1.astype(bf),                                             # [2048, 120]
        "fb1": p["fc1_b"].reshape(1, -1).astype(f32),
        "fw2": p["fc2_w"].T.astype(bf),                                    # [120, 84]
        "fb2": p["fc2_b"].reshape(1, -1).astype(f32),
        "fw3": p["fc3_w"].T.astype(bf),                                    # [84, C]
        "fb3": p["fc3_b"].reshape(1, -1).astype(f32),
    }


# ---------------------------------------------------------------------------
# Pure-JAX reference (f32) for a tolerance check
# ---------------------------------------------------------------------------
def net_reference(x, p):
    dn = ("NCHW", "OIHW", "NCHW")
    y = lax.conv_general_dilated(x, p["conv1_w"], (1, 1), "VALID", dimension_numbers=dn)
    y = jnp.maximum(y + p["conv1_b"][None, :, None, None], 0.0)
    y = lax.reduce_window(y, -jnp.inf, lax.max, (1, 1, 2, 2), (1, 1, 2, 2), "VALID")
    y = lax.conv_general_dilated(y, p["conv2_w"], (1, 1), "VALID", dimension_numbers=dn)
    y = jnp.maximum(y + p["conv2_b"][None, :, None, None], 0.0)
    y = lax.reduce_window(y, -jnp.inf, lax.max, (1, 1, 2, 2), (1, 1, 2, 2), "VALID")
    y = y.reshape(y.shape[0], -1)                                  # NCHW flatten
    y = jnp.maximum(y @ p["fc1_w"].T + p["fc1_b"], 0.0)
    y = jnp.maximum(y @ p["fc2_w"].T + p["fc2_b"], 0.0)
    return y @ p["fc3_w"].T + p["fc3_b"]


if __name__ == "__main__":
    key = jax.random.PRNGKey(0)
    pkey, xkey = jax.random.split(key)
    params = init_params(pkey)
    kparams = prepare_params(params)
    # The architecture requires 32x32 spatial input (32 -> 28 -> 14 -> 10 -> 5).
    x = jax.random.normal(xkey, (2, 3, 32, 32), jnp.float32)

    fwd = jax.jit(net_forward)
    out = jax.block_until_ready(fwd(x, kparams))
    assert out.shape == (2, 10), out.shape

    ref = net_reference(x, params)
    max_err = float(jnp.max(jnp.abs(out - ref)))
    assert bool(jnp.allclose(out, ref, rtol=1e-1, atol=5e-2)), max_err
    print("KERNEL_OK")
</pallas_src>

<mosaic_0001>
module attributes {stable_mosaic.version = 11 : i64} {
  func.func @_conv_relu_pool_kernel(%arg0: memref<75x2048xbf16, #tpu.memory_space<vmem>>, %arg1: memref<6x75xbf16, #tpu.memory_space<vmem>>, %arg2: memref<6x1xf32, #tpu.memory_space<vmem>>, %arg3: memref<6x512xbf16, #tpu.memory_space<vmem>>) attributes {dimension_semantics = [], scalar_prefetch = 0 : i64, scratch_operands = 0 : i64, tpu.core_type = #tpu.core_type<tc>} {
    %c0 = arith.constant 0 : index
    %c0_0 = arith.constant 0 : index
    %0 = vector.load %arg1[%c0, %c0_0] : memref<6x75xbf16, #tpu.memory_space<vmem>>, vector<6x75xbf16>
    %c0_1 = arith.constant 0 : index
    %c0_2 = arith.constant 0 : index
    %1 = vector.load %arg0[%c0_1, %c0_2] : memref<75x2048xbf16, #tpu.memory_space<vmem>>, vector<75x2048xbf16>
    %cst = arith.constant dense<0.000000e+00> : vector<6x2048xf32>
    %2 = tpu.matmul %0, %1, %cst {dimension_numbers = #tpu.dot_dimension_numbers<[1], [0], [0], [1], [0, 0, 1, 1], [], []>} : vector<6x75xbf16>, vector<75x2048xbf16>, vector<6x2048xf32> -> vector<6x2048xf32>
    %3 = vector.extract_strided_slice %2 {offsets = [0, 0], sizes = [6, 512], strides = [1, 1]} : vector<6x2048xf32> to vector<6x512xf32>
    %4 = vector.extract_strided_slice %2 {offsets = [0, 512], sizes = [6, 512], strides = [1, 1]} : vector<6x2048xf32> to vector<6x512xf32>
    %5 = arith.maximumf %3, %4 : vector<6x512xf32>
    %6 = vector.extract_strided_slice %2 {offsets = [0, 1024], sizes = [6, 512], strides = [1, 1]} : vector<6x2048xf32> to vector<6x512xf32>
    %7 = vector.extract_strided_slice %2 {offsets = [0, 1536], sizes = [6, 512], strides = [1, 1]} : vector<6x2048xf32> to vector<6x512xf32>
    %8 = arith.maximumf %6, %7 : vector<6x512xf32>
    %9 = arith.maximumf %5, %8 : vector<6x512xf32>
    %c0_3 = arith.constant 0 : index
    %c0_4 = arith.constant 0 : index
    %10 = vector.load %arg2[%c0_3, %c0_4] : memref<6x1xf32, #tpu.memory_space<vmem>>, vector<6x1xf32>
    %11 = vector.broadcast %10 : vector<6x1xf32> to vector<6x512xf32>
    %12 = arith.addf %9, %11 : vector<6x512xf32>
    %cst_5 = arith.constant 0.000000e+00 : f32
    %13 = vector.broadcast %cst_5 : f32 to vector<6x512xf32>
    %14 = arith.maximumf %12, %13 : vector<6x512xf32>
    %15 = arith.truncf %14 : vector<6x512xf32> to vector<6x512xbf16>
    %c0_6 = arith.constant 0 : index
    %c0_7 = arith.constant 0 : index
    %16 = vector.load %arg3[%c0_6, %c0_7] : memref<6x512xbf16, #tpu.memory_space<vmem>>, vector<6x512xbf16>
    tpu.vector_store %arg3[%c0_6, %c0_7], %15 {strides = array<i32>} : memref<6x512xbf16, #tpu.memory_space<vmem>>, vector<6x512xbf16>,
    return
  }
}

module attributes {stable_mosaic.version = 11 : i64} {
  func.func @_conv_pool_fc_kernel(%arg0: memref<150x1024xbf16, #tpu.memory_space<vmem>>, %arg1: memref<16x150xbf16, #tpu.memory_space<vmem>>, %arg2: memref<16x1xf32, #tpu.memory_space<vmem>>, %arg3: memref<2048x120xbf16, #tpu.memory_space<vmem>>, %arg4: memref<1x120xf32, #tpu.memory_space<vmem>>, %arg5: memref<120x84xbf16, #tpu.memory_space<vmem>>, %arg6: memref<1x84xf32, #tpu.memory_space<vmem>>, %arg7: memref<84x10xbf16, #tpu.memory_space<vmem>>, %arg8: memref<1x10xf32, #tpu.memory_space<vmem>>, %arg9: memref<2x10xf32, #tpu.memory_space<vmem>>) attributes {dimension_semantics = [], scalar_prefetch = 0 : i64, scratch_operands = 0 : i64, tpu.core_type = #tpu.core_type<tc>} {
    %c0 = arith.constant 0 : index
    %c0_0 = arith.constant 0 : index
    %0 = vector.load %arg1[%c0, %c0_0] : memref<16x150xbf16, #tpu.memory_space<vmem>>, vector<16x150xbf16>
    %c0_1 = arith.constant 0 : index
    %c0_2 = arith.constant 0 : index
    %1 = vector.load %arg0[%c0_1, %c0_2] : memref<150x1024xbf16, #tpu.memory_space<vmem>>, vector<150x1024xbf16>
    %cst = arith.constant dense<0.000000e+00> : vector<16x1024xf32>
    %2 = tpu.matmul %0, %1, %cst {dimension_numbers = #tpu.dot_dimension_numbers<[1], [0], [0], [1], [0, 0, 1, 1], [], []>} : vector<16x150xbf16>, vector<150x1024xbf16>, vector<16x1024xf32> -> vector<16x1024xf32>
    %3 = vector.extract_strided_slice %2 {offsets = [0, 0], sizes = [16, 256], strides = [1, 1]} : vector<16x1024xf32> to vector<16x256xf32>
    %4 = vector.extract_strided_slice %2 {offsets = [0, 256], sizes = [16, 256], strides = [1, 1]} : vector<16x1024xf32> to vector<16x256xf32>
    %5 = arith.maximumf %3, %4 : vector<16x256xf32>
    %6 = vector.extract_strided_slice %2 {offsets = [0, 512], sizes = [16, 256], strides = [1, 1]} : vector<16x1024xf32> to vector<16x256xf32>
    %7 = vector.extract_strided_slice %2 {offsets = [0, 768], sizes = [16, 256], strides = [1, 1]} : vector<16x1024xf32> to vector<16x256xf32>
    %8 = arith.maximumf %6, %7 : vector<16x256xf32>
    %9 = arith.maximumf %5, %8 : vector<16x256xf32>
    %c0_3 = arith.constant 0 : index
    %c0_4 = arith.constant 0 : index
    %10 = vector.load %arg2[%c0_3, %c0_4] : memref<16x1xf32, #tpu.memory_space<vmem>>, vector<16x1xf32>
    %11 = vector.broadcast %10 : vector<16x1xf32> to vector<16x256xf32>
    %12 = arith.addf %9, %11 : vector<16x256xf32>
    %cst_5 = arith.constant 0.000000e+00 : f32
    %13 = vector.broadcast %cst_5 : f32 to vector<16x256xf32>
    %14 = arith.maximumf %12, %13 : vector<16x256xf32>
    %15 = vector.extract_strided_slice %14 {offsets = [0, 0], sizes = [16, 128], strides = [1, 1]} : vector<16x256xf32> to vector<16x128xf32>
    %16 = vector.extract_strided_slice %15 {offsets = [0, 0], sizes = [1, 128], strides = [1, 1]} : vector<16x128xf32> to vector<1x128xf32>
    %17 = vector.extract_strided_slice %15 {offsets = [1, 0], sizes = [1, 128], strides = [1, 1]} : vector<16x128xf32> to vector<1x128xf32>
    %18 = vector.extract_strided_slice %15 {offsets = [2, 0], sizes = [1, 128], strides = [1, 1]} : vector<16x128xf32> to vector<1x128xf32>
    %19 = vector.extract_strided_slice %15 {offsets = [3, 0], sizes = [1, 128], strides = [1, 1]} : vector<16x128xf32> to vector<1x128xf32>
    %20 = vector.extract_strided_slice %15 {offsets = [4, 0], sizes = [1, 128], strides = [1, 1]} : vector<16x128xf32> to vector<1x128xf32>
    %21 = vector.extract_strided_slice %15 {offsets = [5, 0], sizes = [1, 128], strides = [1, 1]} : vector<16x128xf32> to vector<1x128xf32>
    %22 = vector.extract_strided_slice %15 {offsets = [6, 0], sizes = [1, 128], strides = [1, 1]} : vector<16x128xf32> to vector<1x128xf32>
    %23 = vector.extract_strided_slice %15 {offsets = [7, 0], sizes = [1, 128], strides = [1, 1]} : vector<16x128xf32> to vector<1x128xf32>
    %24 = vector.extract_strided_slice %15 {offsets = [8, 0], sizes = [1, 128], strides = [1, 1]} : vector<16x128xf32> to vector<1x128xf32>
    %25 = vector.extract_strided_slice %15 {offsets = [9, 0], sizes = [1, 128], strides = [1, 1]} : vector<16x128xf32> to vector<1x128xf32>
    %26 = vector.extract_strided_slice %15 {offsets = [10, 0], sizes = [1, 128], strides = [1, 1]} : vector<16x128xf32> to vector<1x128xf32>
    %27 = vector.extract_strided_slice %15 {offsets = [11, 0], sizes = [1, 128], strides = [1, 1]} : vector<16x128xf32> to vector<1x128xf32>
    %28 = vector.extract_strided_slice %15 {offsets = [12, 0], sizes = [1, 128], strides = [1, 1]} : vector<16x128xf32> to vector<1x128xf32>
    %29 = vector.extract_strided_slice %15 {offsets = [13, 0], sizes = [1, 128], strides = [1, 1]} : vector<16x128xf32> to vector<1x128xf32>
    %30 = vector.extract_strided_slice %15 {offsets = [14, 0], sizes = [1, 128], strides = [1, 1]} : vector<16x128xf32> to vector<1x128xf32>
    %31 = vector.extract_strided_slice %15 {offsets = [15, 0], sizes = [1, 128], strides = [1, 1]} : vector<16x128xf32> to vector<1x128xf32>
    %32 = tpu.concatenate %16, %17, %18, %19, %20, %21, %22, %23, %24, %25, %26, %27, %28, %29, %30, %31 in 1 : vector<1x128xf32>, vector<1x128xf32>, vector<1x128xf32>, vector<1x128xf32>, vector<1x128xf32>, vector<1x128xf32>, vector<1x128xf32>, vector<1x128xf32>, vector<1x128xf32>, vector<1x128xf32>, vector<1x128xf32>, vector<1x128xf32>, vector<1x128xf32>, vector<1x128xf32>, vector<1x128xf32>, vector<1x128xf32> -> vector<1x2048xf32>
    %33 = vector.extract_strided_slice %14 {offsets = [0, 128], sizes = [16, 128], strides = [1, 1]} : vector<16x256xf32> to vector<16x128xf32>
    %34 = vector.extract_strided_slice %33 {offsets = [0, 0], sizes = [1, 128], strides = [1, 1]} : vector<16x128xf32> to vector<1x128xf32>
    %35 = vector.extract_strided_slice %33 {offsets = [1, 0], sizes = [1, 128], strides = [1, 1]} : vector<16x128xf32> to vector<1x128xf32>
    %36 = vector.extract_strided_slice %33 {offsets = [2, 0], sizes = [1, 128], strides = [1, 1]} : vector<16x128xf32> to vector<1x128xf32>
    %37 = vector.extract_strided_slice %33 {offsets = [3, 0], sizes = [1, 128], strides = [1, 1]} : vector<16x128xf32> to vector<1x128xf32>
    %38 = vector.extract_strided_slice %33 {offsets = [4, 0], sizes = [1, 128], strides = [1, 1]} : vector<16x128xf32> to vector<1x128xf32>
    %39 = vector.extract_strided_slice %33 {offsets = [5, 0], sizes = [1, 128], strides = [1, 1]} : vector<16x128xf32> to vector<1x128xf32>
    %40 = vector.extract_strided_slice %33 {offsets = [6, 0], sizes = [1, 128], strides = [1, 1]} : vector<16x128xf32> to vector<1x128xf32>
    %41 = vector.extract_strided_slice %33 {offsets = [7, 0], sizes = [1, 128], strides = [1, 1]} : vector<16x128xf32> to vector<1x128xf32>
    %42 = vector.extract_strided_slice %33 {offsets = [8, 0], sizes = [1, 128], strides = [1, 1]} : vector<16x128xf32> to vector<1x128xf32>
    %43 = vector.extract_strided_slice %33 {offsets = [9, 0], sizes = [1, 128], strides = [1, 1]} : vector<16x128xf32> to vector<1x128xf32>
    %44 = vector.extract_strided_slice %33 {offsets = [10, 0], sizes = [1, 128], strides = [1, 1]} : vector<16x128xf32> to vector<1x128xf32>
    %45 = vector.extract_strided_slice %33 {offsets = [11, 0], sizes = [1, 128], strides = [1, 1]} : vector<16x128xf32> to vector<1x128xf32>
    %46 = vector.extract_strided_slice %33 {offsets = [12, 0], sizes = [1, 128], strides = [1, 1]} : vector<16x128xf32> to vector<1x128xf32>
    %47 = vector.extract_strided_slice %33 {offsets = [13, 0], sizes = [1, 128], strides = [1, 1]} : vector<16x128xf32> to vector<1x128xf32>
    %48 = vector.extract_strided_slice %33 {offsets = [14, 0], sizes = [1, 128], strides = [1, 1]} : vector<16x128xf32> to vector<1x128xf32>
    %49 = vector.extract_strided_slice %33 {offsets = [15, 0], sizes = [1, 128], strides = [1, 1]} : vector<16x128xf32> to vector<1x128xf32>
    %50 = tpu.concatenate %34, %35, %36, %37, %38, %39, %40, %41, %42, %43, %44, %45, %46, %47, %48, %49 in 1 : vector<1x128xf32>, vector<1x128xf32>, vector<1x128xf32>, vector<1x128xf32>, vector<1x128xf32>, vector<1x128xf32>, vector<1x128xf32>, vector<1x128xf32>, vector<1x128xf32>, vector<1x128xf32>, vector<1x128xf32>, vector<1x128xf32>, vector<1x128xf32>, vector<1x128xf32>, vector<1x128xf32>, vector<1x128xf32> -> vector<1x2048xf32>
    %51 = tpu.concatenate %32, %50 in 0 : vector<1x2048xf32>, vector<1x2048xf32> -> vector<2x2048xf32>
    %52 = arith.truncf %51 : vector<2x2048xf32> to vector<2x2048xbf16>
    %c0_6 = arith.constant 0 : index
    %c0_7 = arith.constant 0 : index
    %53 = vector.load %arg3[%c0_6, %c0_7] : memref<2048x120xbf16, #tpu.memory_space<vmem>>, vector<2048x120xbf16>
    %cst_8 = arith.constant dense<0.000000e+00> : vector<2x120xf32>
    %54 = tpu.matmul %52, %53, %cst_8 {dimension_numbers = #tpu.dot_dimension_numbers<[1], [0], [0], [1], [0, 0, 1, 1], [], []>} : vector<2x2048xbf16>, vector<2048x120xbf16>, vector<2x120xf32> -> vector<2x120xf32>
    %c0_9 = arith.constant 0 : index
    %c0_10 = arith.constant 0 : index
    %55 = vector.load %arg4[%c0_9, %c0_10] : memref<1x120xf32, #tpu.memory_space<vmem>>, vector<1x120xf32>
    %56 = vector.broadcast %55 : vector<1x120xf32> to vector<2x120xf32>
    %57 = arith.addf %54, %56 : vector<2x120xf32>
    %cst_11 = arith.constant 0.000000e+00 : f32
    %58 = vector.broadcast %cst_11 : f32 to vector<2x120xf32>
    %59 = arith.maximumf %57, %58 : vector<2x120xf32>
    %60 = arith.truncf %59 : vector<2x120xf32> to vector<2x120xbf16>
    %c0_12 = arith.constant 0 : index
    %c0_13 = arith.constant 0 : index
    %61 = vector.load %arg5[%c0_12, %c0_13] : memref<120x84xbf16, #tpu.memory_space<vmem>>, vector<120x84xbf16>
    %cst_14 = arith.constant dense<0.000000e+00> : vector<2x84xf32>
    %62 = tpu.matmul %60, %61, %cst_14 {dimension_numbers = #tpu.dot_dimension_numbers<[1], [0], [0], [1], [0, 0, 1, 1], [], []>} : vector<2x120xbf16>, vector<120x84xbf16>, vector<2x84xf32> -> vector<2x84xf32>
    %c0_15 = arith.constant 0 : index
    %c0_16 = arith.constant 0 : index
    %63 = vector.load %arg6[%c0_15, %c0_16] : memref<1x84xf32, #tpu.memory_space<vmem>>, vector<1x84xf32>
    %64 = vector.broadcast %63 : vector<1x84xf32> to vector<2x84xf32>
    %65 = arith.addf %62, %64 : vector<2x84xf32>
    %cst_17 = arith.constant 0.000000e+00 : f32
    %66 = vector.broadcast %cst_17 : f32 to vector<2x84xf32>
    %67 = arith.maximumf %65, %66 : vector<2x84xf32>
    %68 = arith.truncf %67 : vector<2x84xf32> to vector<2x84xbf16>
    %c0_18 = arith.constant 0 : index
    %c0_19 = arith.constant 0 : index
    %69 = vector.load %arg7[%c0_18, %c0_19] : memref<84x10xbf16, #tpu.memory_space<vmem>>, vector<84x10xbf16>
    %cst_20 = arith.constant dense<0.000000e+00> : vector<2x10xf32>
    %70 = tpu.matmul %68, %69, %cst_20 {dimension_numbers = #tpu.dot_dimension_numbers<[1], [0], [0], [1], [0, 0, 1, 1], [], []>} : vector<2x84xbf16>, vector<84x10xbf16>, vector<2x10xf32> -> vector<2x10xf32>
    %c0_21 = arith.constant 0 : index
    %c0_22 = arith.constant 0 : index
    %71 = vector.load %arg8[%c0_21, %c0_22] : memref<1x10xf32, #tpu.memory_space<vmem>>, vector<1x10xf32>
    %72 = vector.broadcast %71 : vector<1x10xf32> to vector<2x10xf32>
    %73 = arith.addf %70, %72 : vector<2x10xf32>
    %c0_23 = arith.constant 0 : index
    %c0_24 = arith.constant 0 : index
    %74 = vector.load %arg9[%c0_23, %c0_24] : memref<2x10xf32, #tpu.memory_space<vmem>>, vector<2x10xf32>
    tpu.vector_store %arg9[%c0_23, %c0_24], %73 {strides = array<i32>} : memref<2x10xf32, #tpu.memory_space<vmem>>, vector<2x10xf32>,
    return
  }
}

</mosaic_0001>

<bundles_post_ra>
// kernel: net_forward.2
= control target key start
LH: loop header
LB: loop body
LE: loop exit
PB: predicated region body
PF: predicated region fallthrough
CT: control target
= control target key end

     0   :  { %v1007_v3 = vmov 0   ;;  %vm484_vm0 = vcmask 1044480   ;;  %vm485_vm1 = vcmask 1045504   ;;  %v1008_v29 = vmov 65535   ;;  %s1337_s0 = inlined_call_operand.vmem [shape: bf16[75,2048], index: 0, kind: input, shape index: {}]   ;;  %s1338_s1 = inlined_call_operand.vmem [shape: bf16[6,75], index: 1, kind: input, shape index: {}]   ;;  %s1339_s2 = inlined_call_operand.vmem [shape: f32[6,1], index: 2, kind: input, shape index: {}]   ;;  %s1340_s3 = inlined_call_operand.vmem [shape: bf16[6,512], index: 3, kind: output, shape index: {}]  }
   0x1   :  { %v16_v0 = vld [vmem:[%s1337_s0] sm:$0xff]  ;;  %v17_v2 = vld [vmem:[%s1337_s0 + $0x8] sm:$0xff]  ;;  %568 = vmatprep.mubr.bf16.mxu0 %v1007_v3  ;;  %609 = vmatprep.mubr.bf16.mxu1 %v1007_v3  ;;  %v486_v30 = vsel %vm484_vm0, 4294967295, %v1008_v29  ;;  %v18_v46 = vld [vmem:[%s1337_s0 + $0x10] sm:$0xff]  ;;  %vm480_vm2 = vcmask 613376  }
   0x2   :  { %v24_v1 = vld [vmem:[%s1337_s0 + $0x40] sm:$0xff]  ;;  %v25_v5 = vld [vmem:[%s1337_s0 + $0x48] sm:$0xff]  ;;  %1006 = vset.pattern.permute.xlu0 %v1007_v3  ;;  %v1092_v38 = vsel %vm485_vm1, %v486_v30, 0  ;;  %v26_v47 = vld [vmem:[%s1337_s0 + $0x50] sm:$0xff] }
   0x3   :  { %v913_v4 = vcombine.high %v16_v0, %v24_v1  ;;  %v912_v6 = vcombine.low %v16_v0, %v24_v1  ;;  %v32_v7 = vld [vmem:[%s1337_s0 + $0x80] sm:$0xff]  ;;  %v915_v9 = vcombine.high %v17_v2, %v25_v5  ;;  %v914_v10 = vcombine.low %v17_v2, %v25_v5  ;;  %v33_v12 = vld [vmem:[%s1337_s0 + $0x88] sm:$0xff]  ;;  %v19_v48 = vld [vmem:[%s1337_s0 + $0x18] sm:$0xff] }
   0x4   :  { %v40_v8 = vld [vmem:[%s1337_s0 + $0xc0] sm:$0xff]  ;;  %v41_v13 = vld [vmem:[%s1337_s0 + $0xc8] sm:$0xff]  ;;  %v27_v49 = vld [vmem:[%s1337_s0 + $0x58] sm:$0xff]  ;;  %v917_v52 = vcombine.high %v18_v46, %v26_v47  ;;  %v916_v59 = vcombine.low %v18_v46, %v26_v47 }
   0x5   :  { %v929_v11 = vcombine.high %v32_v7, %v40_v8  ;;  %v48_v14 = vld [vmem:[%s1337_s0 + $0x100] sm:$0xff]  ;;  %536 = vmatprep.subr.bf16.mxu0 %v913_v4  ;;  %v931_v15 = vcombine.high %v33_v12, %v41_v13  ;;  %v49_v17 = vld [vmem:[%s1337_s0 + $0x108] sm:$0xff]  ;;  %577 = vmatprep.subr.bf16.mxu1 %v915_v9  ;;  %v928_v19 = vcombine.low %v32_v7, %v40_v8  ;;  %v34_v54 = vld [vmem:[%s1337_s0 + $0x90] sm:$0xff] }
   0x6   :  { %v56_v16 = vld [vmem:[%s1337_s0 + $0x140] sm:$0xff]  ;;  %v57_v18 = vld [vmem:[%s1337_s0 + $0x148] sm:$0xff]  ;;  %537 = vmatpush1.bf16.msra.mxu0 %v912_v6  ;;  %578 = vmatpush1.bf16.msra.mxu1 %v914_v10  ;;  %v930_v20 = vcombine.low %v33_v12, %v41_v13  ;;  %v919_v53 = vcombine.high %v19_v48, %v27_v49  ;;  %v42_v55 = vld [vmem:[%s1337_s0 + $0xd0] sm:$0xff]  ;;  %v918_v60 = vcombine.low %v19_v48, %v27_v49 }
   0x7   :  { %538 = vmatprep.subr.bf16.mxu0 %v929_v11  ;;  %v945_v21 = vcombine.high %v48_v14, %v56_v16  ;;  %v64_v22 = vld [vmem:[%s1337_s0 + $0x180] sm:$0xff]  ;;  %579 = vmatprep.subr.bf16.mxu1 %v931_v15  ;;  %v947_v24 = vcombine.high %v49_v17, %v57_v18  ;;  %v65_v25 = vld [vmem:[%s1337_s0 + $0x188] sm:$0xff]  ;;  %v944_v33 = vcombine.low %v48_v14, %v56_v16  ;;  %v35_v56 = vld [vmem:[%s1337_s0 + $0x98] sm:$0xff] }
   0x8   :  { %v72_v23 = vld [vmem:[%s1337_s0 + $0x1c0] sm:$0xff]  ;;  %v73_v28 = vld [vmem:[%s1337_s0 + $0x1c8] sm:$0xff]  ;;  %v946_v34 = vcombine.low %v49_v17, %v57_v18  ;;  %v43_v57 = vld [vmem:[%s1337_s0 + $0xd8] sm:$0xff]  ;;  %v933_v61 = vcombine.high %v34_v54, %v42_v55  ;;  %v932_v4 = vcombine.low %v34_v54, %v42_v55 }
   0x9   :  { %v80_v26 = vld [vmem:[%s1337_s0 + $0x200] sm:$0xff]  ;;  %v81_v31 = vld [vmem:[%s1337_s0 + $0x208] sm:$0xff]  ;;  %v961_v35 = vcombine.high %v64_v22, %v72_v23  ;;  %v963_v37 = vcombine.high %v65_v25, %v73_v28  ;;  %v960_v40 = vcombine.low %v64_v22, %v72_v23  ;;  %v962_v42 = vcombine.low %v65_v25, %v73_v28  ;;  %v50_v63 = vld [vmem:[%s1337_s0 + $0x110] sm:$0xff] }
   0xa   :  { %v88_v27 = vld [vmem:[%s1337_s0 + $0x240] sm:$0x33]  ;;  %v89_v32 = vld [vmem:[%s1337_s0 + $0x248] sm:$0x33]  ;;  %539 = vmatpush1.bf16.msra.mxu0 %v928_v19  ;;  %580 = vmatpush1.bf16.msra.mxu1 %v930_v20  ;;  %v935_v62 = vcombine.high %v35_v56, %v43_v57  ;;  %v58_v0 = vld [vmem:[%s1337_s0 + $0x150] sm:$0xff]  ;;  %v934_v7 = vcombine.low %v35_v56, %v43_v57 }
   0xb   :  { %540 = vmatprep.subr.bf16.mxu0 %v945_v21  ;;  %v977_v36 = vcombine.high %v80_v26, %v88_v27  ;;  %581 = vmatprep.subr.bf16.mxu1 %v947_v24  ;;  %v979_v39 = vcombine.high %v81_v31, %v89_v32  ;;  %v976_v41 = vcombine.low %v80_v26, %v88_v27  ;;  %v1125_v58 = vld [vmem:[%s1338_s1] sm:$0x7]  ;;  %v51_v1 = vld [vmem:[%s1337_s0 + $0x118] sm:$0xff]  ;;  %v66_v5 = vld [vmem:[%s1337_s0 + $0x190] sm:$0xff] }
   0xc   :  { %v978_v44 = vcombine.low %v81_v31, %v89_v32  ;;  %v59_v2 = vld [vmem:[%s1337_s0 + $0x158] sm:$0xff]  ;;  %v74_v6 = vld [vmem:[%s1337_s0 + $0x1d0] sm:$0xff]  ;;  %v949_v8 = vcombine.high %v50_v63, %v58_v0  ;;  %v876_v18 = vld [vmem:[%s1339_s2] sm:$0x3f]  ;;  %v948_v19 = vcombine.low %v50_v63, %v58_v0 }
   0xd   :  { %v492_v43 = vand.u32 %v977_v36, %v1092_v38  ;;  %v498_v45 = vand.u32 %v979_v39, %v1092_v38  ;;  %v489_v50 = vand.u32 %v976_v41, %v1092_v38  ;;  %v67_v9 = vld [vmem:[%s1337_s0 + $0x198] sm:$0xff]  ;;  %v82_v11 = vld [vmem:[%s1337_s0 + $0x210] sm:$0xff]  ;;  %v951_v12 = vcombine.high %v51_v1, %v59_v2  ;;  %879 = vperm.xlu0 %1006, %v876_v18   ;;  %v29_v36 = vld [vmem:[%s1337_s0 + $0x68] sm:$0xff] }
   0xe   :  { %541 = vmatpush1.bf16.msra.mxu0 %v944_v33  ;;  %582 = vmatpush1.bf16.msra.mxu1 %v946_v34  ;;  %v495_v51 = vand.u32 %v978_v44, %v1092_v38  ;;  %v75_v10 = vld [vmem:[%s1337_s0 + $0x1d8] sm:$0xff]  ;;  %v90_v13 = vld [vmem:[%s1337_s0 + $0x250] sm:$0x33]  ;;  %v950_v21 = vcombine.low %v51_v1, %v59_v2  ;;  %v965_v22 = vcombine.high %v66_v5, %v74_v6  ;;  %v20_v33 = vld [vmem:[%s1337_s0 + $0x20] sm:$0xff] }
   0xf   :  { %542 = vmatprep.subr.bf16.mxu0 %v961_v35  ;;  %583 = vmatprep.subr.bf16.mxu1 %v963_v37  ;;  %v1165_v14 = vld [vmem:[%s1337_s0 + $0x238] sm:$0xff]  ;;  %v981_v23 = vcombine.high %v82_v11, %v90_v13  ;;  %v967_v24 = vcombine.high %v67_v9, %v75_v10  ;;  %v964_v27 = vcombine.low %v66_v5, %v74_v6  ;;  %v28_v34 = vld [vmem:[%s1337_s0 + $0x60] sm:$0xff]  ;;  %v21_v35 = vld [vmem:[%s1337_s0 + $0x28] sm:$0xff] }
  0x10   :  { %v1170_v15 = vld [vmem:[%s1337_s0 + $0x278] sm:$0x33]  ;;  %v980_v28 = vcombine.low %v82_v11, %v90_v13  ;;  %v966_v29 = vcombine.low %v67_v9, %v75_v10  ;;  %v923_v41 = vcombine.high %v21_v35, %v29_v36  ;;  %v37_v44 = vld [vmem:[%s1337_s0 + $0xa8] sm:$0xff]  ;;  %v920_v46 = vcombine.low %v20_v33, %v28_v34  ;;  %v68_v57 = vld [vmem:[%s1337_s0 + $0x1a0] sm:$0xff] }
  0x11   :  { %v83_v16 = vld [vmem:[%s1337_s0 + $0x218] sm:$0xff]  ;;  %v990_v20 = vcombine.low %v1165_v14, %v1170_v15  ;;  %v504_v30 = vand.u32 %v981_v23, %v1092_v38  ;;  %v922_v47 = vcombine.low %v21_v35, %v29_v36  ;;  %v92_v63 = vld [vmem:[%s1337_s0 + $0x260] sm:$0x33]  ;;  %v77_v0 = vld [vmem:[%s1337_s0 + $0x1e8] sm:$0xff] }
  0x12   :  { %543 = vmatpush1.bf16.msra.mxu0 %v960_v40  ;;  %584 = vmatpush1.bf16.msra.mxu1 %v962_v42  ;;  %v91_v17 = vld [vmem:[%s1337_s0 + $0x258] sm:$0x33]  ;;  %v501_v37 = vand.u32 %v980_v28, %v1092_v38  ;;  %v921_v40 = vcombine.high %v20_v33, %v28_v34  ;;  %v36_v42 = vld [vmem:[%s1337_s0 + $0xa0] sm:$0xff]  ;;  %v85_v1 = vld [vmem:[%s1337_s0 + $0x228] sm:$0xff] }
  0x13   :  { %544 = vmatprep.subr.bf16.mxu0 %v492_v43  ;;  %585 = vmatprep.subr.bf16.mxu1 %v498_v45  ;;  %v983_v25 = vcombine.high %v83_v16, %v91_v17  ;;  %v1185_v26 = vand.u32 %v990_v20, %v1092_v38  ;;  %v982_v31 = vcombine.low %v83_v16, %v91_v17  ;;  %v44_v43 = vld [vmem:[%s1337_s0 + $0xe0] sm:$0xff]  ;;  %v45_v45 = vld [vmem:[%s1337_s0 + $0xe8] sm:$0xff]  ;;  %v22_v18 = vld [vmem:[%s1337_s0 + $0x30] sm:$0xff] }
  0x14   :  { %v937_v48 = vcombine.high %v36_v42, %v44_v43  ;;  %v939_v49 = vcombine.high %v37_v44, %v45_v45  ;;  %v936_v54 = vcombine.low %v36_v42, %v44_v43  ;;  %v938_v55 = vcombine.low %v37_v44, %v45_v45  ;;  %v93_v2 = vld [vmem:[%s1337_s0 + $0x268] sm:$0x33]  ;;  %v23_v20 = vld [vmem:[%s1337_s0 + $0x38] sm:$0xff]  ;;  %v46_v28 = vld [vmem:[%s1337_s0 + $0xf0] sm:$0xff] }
  0x15   :  { %v510_v32 = vand.u32 %v983_v25, %v1092_v38  ;;  %v507_v39 = vand.u32 %v982_v31, %v1092_v38  ;;  %v987_v9 = vcombine.high %v85_v1, %v93_v2  ;;  %v986_v16 = vcombine.low %v85_v1, %v93_v2  ;;  %v54_v35 = vld [vmem:[%s1337_s0 + $0x130] sm:$0xff] }
  0x16   :  { %545 = vmatpush1.bf16.msra.mxu0 %v489_v50  ;;  %586 = vmatpush1.bf16.msra.mxu1 %v495_v51  ;;  %v52_v50 = vld [vmem:[%s1337_s0 + $0x120] sm:$0xff]  ;;  %v62_v36 = vld [vmem:[%s1337_s0 + $0x170] sm:$0xff] }
  0x17   :  { %618 = vmatprep.subr.bf16.mxu0 %v917_v52  ;;  %659 = vmatprep.subr.bf16.mxu1 %v919_v53  ;;  %v60_v51 = vld [vmem:[%s1337_s0 + $0x160] sm:$0xff]  ;;  %v53_v52 = vld [vmem:[%s1337_s0 + $0x128] sm:$0xff]  ;;  %v522_v17 = vand.u32 %v987_v9, %v1092_v38  ;;  %v519_v23 = vand.u32 %v986_v16, %v1092_v38  ;;  %v957_v42 = vcombine.high %v54_v35, %v62_v36  ;;  %v70_v43 = vld [vmem:[%s1337_s0 + $0x1b0] sm:$0xff] }
  0x18   :  { %v61_v53 = vld [vmem:[%s1337_s0 + $0x168] sm:$0xff]  ;;  %v953_v56 = vcombine.high %v52_v50, %v60_v51  ;;  %v78_v45 = vld [vmem:[%s1337_s0 + $0x1f0] sm:$0xff] }
  0x19   :  { %992 = vmatmul.mubr.msk.bf16.vlgmr.msra.gmra.mrb[0].mxu0 %vm480_vm2, %v1125_v58  ;;  %993 = vmatmul.mubr.msk.bf16.vlgmr.msra.gmra.mrb[0].mxu1 %vm480_vm2, %v1125_v58  ;;  %v954_v5 = vcombine.low %v53_v52, %v61_v53 }
  0x1a   :  { %619 = vmatpush1.bf16.msra.mxu0 %v916_v59  ;;  %660 = vmatpush1.bf16.msra.mxu1 %v918_v60  ;;  %v76_v59 = vld [vmem:[%s1337_s0 + $0x1e0] sm:$0xff]  ;;  %v955_v60 = vcombine.high %v53_v52, %v61_v53  ;;  %v973_v52 = vcombine.high %v70_v43, %v78_v45 }
  0x1b   :  { %620 = vmatprep.subr.bf16.mxu0 %v933_v61  ;;  %661 = vmatprep.subr.bf16.mxu1 %v935_v62  ;;  %v69_v61 = vld [vmem:[%s1337_s0 + $0x1a8] sm:$0xff]  ;;  %v84_v62 = vld [vmem:[%s1337_s0 + $0x220] sm:$0xff]  ;;  %v969_v6 = vcombine.high %v68_v57, %v76_v59  ;;  %v968_v10 = vcombine.low %v68_v57, %v76_v59 }
  0x1c   :  { %650 = vmatprep.mubr.bf16.mxu0 %v1007_v3  ;;  %691 = vmatprep.mubr.bf16.mxu1 %v1007_v3  ;;  %v984_v11 = vcombine.low %v84_v62, %v92_v63 }
  0x1e   :  { %621 = vmatpush1.bf16.msra.mxu0 %v932_v4  ;;  %662 = vmatpush1.bf16.msra.mxu1 %v934_v7  ;;  %v952_v4 = vcombine.low %v52_v50, %v60_v51  ;;  %v985_v7 = vcombine.high %v84_v62, %v92_v63  ;;  %v956_v50 = vcombine.low %v54_v35, %v62_v36 }
  0x1f   :  { %622 = vmatprep.subr.bf16.mxu0 %v949_v8  ;;  %663 = vmatprep.subr.bf16.mxu1 %v951_v12  ;;  %v971_v8 = vcombine.high %v69_v61, %v77_v0  ;;  %v970_v12 = vcombine.low %v69_v61, %v77_v0 }
  0x20   :  { %v516_v13 = vand.u32 %v985_v7, %v1092_v38 }
  0x22   :  { %623 = vmatpush1.bf16.msra.mxu0 %v948_v19  ;;  %664 = vmatpush1.bf16.msra.mxu1 %v950_v21  ;;  %v30_v19 = vld [vmem:[%s1337_s0 + $0x70] sm:$0xff]  ;;  %v31_v21 = vld [vmem:[%s1337_s0 + $0x78] sm:$0xff] }
  0x23   :  { %624 = vmatprep.subr.bf16.mxu0 %v965_v22  ;;  %665 = vmatprep.subr.bf16.mxu1 %v967_v24  ;;  %v513_v22 = vand.u32 %v984_v11, %v1092_v38  ;;  %v925_v24 = vcombine.high %v22_v18, %v30_v19  ;;  %v927_v25 = vcombine.high %v23_v20, %v31_v21 }
  0x24   :  { %v924_v31 = vcombine.low %v22_v18, %v30_v19 }
  0x26   :  { %625 = vmatpush1.bf16.msra.mxu0 %v964_v27  ;;  %666 = vmatpush1.bf16.msra.mxu1 %v966_v29  ;;  %v38_v27 = vld [vmem:[%s1337_s0 + $0xb0] sm:$0xff]  ;;  %v39_v29 = vld [vmem:[%s1337_s0 + $0xb8] sm:$0xff] }
  0x27   :  { %626 = vmatprep.subr.bf16.mxu0 %v504_v30  ;;  %667 = vmatprep.subr.bf16.mxu1 %v510_v32  ;;  %v47_v30 = vld [vmem:[%s1337_s0 + $0xf8] sm:$0xff]  ;;  %v926_v32 = vcombine.low %v23_v20, %v31_v21  ;;  %v941_v33 = vcombine.high %v38_v27, %v46_v28 }
  0x28   :  { %v943_v34 = vcombine.high %v39_v29, %v47_v30 }
  0x2a   :  { %627 = vmatpush1.bf16.msra.mxu0 %v501_v37  ;;  %668 = vmatpush1.bf16.msra.mxu1 %v507_v39  ;;  %v55_v37 = vld [vmem:[%s1337_s0 + $0x138] sm:$0xff] }
  0x2b   :  { %700 = vmatprep.subr.bf16.mxu0 %v921_v40  ;;  %741 = vmatprep.subr.bf16.mxu1 %v923_v41  ;;  %v63_v39 = vld [vmem:[%s1337_s0 + $0x178] sm:$0xff]  ;;  %v940_v40 = vcombine.low %v38_v27, %v46_v28  ;;  %v942_v41 = vcombine.low %v39_v29, %v47_v30 }
  0x2c   :  { %v959_v44 = vcombine.high %v55_v37, %v63_v39  ;;  %v958_v51 = vcombine.low %v55_v37, %v63_v39 }
  0x2d   :  { %994 = vmatmul.mubr.msk.bf16.vlgmr.msra.gmra.mrb[4].mxu0 %vm480_vm2, %v1125_v58  ;;  %995 = vmatmul.mubr.msk.bf16.vlgmr.msra.gmra.mrb[4].mxu1 %vm480_vm2, %v1125_v58 }
  0x2e   :  { %701 = vmatpush1.bf16.msra.mxu0 %v920_v46  ;;  %742 = vmatpush1.bf16.msra.mxu1 %v922_v47  ;;  %v86_v46 = vld [vmem:[%s1337_s0 + $0x230] sm:$0xff] }
  0x2f   :  { %702 = vmatprep.subr.bf16.mxu0 %v937_v48  ;;  %743 = vmatprep.subr.bf16.mxu1 %v939_v49  ;;  %v94_v47 = vld [vmem:[%s1337_s0 + $0x270] sm:$0x33]  ;;  %v71_v48 = vld [vmem:[%s1337_s0 + $0x1b8] sm:$0xff] }
  0x30   :  { %732 = vmatprep.mubr.bf16.mxu0 %v1007_v3  ;;  %773 = vmatprep.mubr.bf16.mxu1 %v1007_v3  ;;  %v79_v49 = vld [vmem:[%s1337_s0 + $0x1f8] sm:$0xff]  ;;  %v989_v53 = vcombine.high %v86_v46, %v94_v47  ;;  %v988_v57 = vcombine.low %v86_v46, %v94_v47 }
  0x31   :  { %v974_v59 = vcombine.low %v71_v48, %v79_v49 }
  0x32   :  { %703 = vmatpush1.bf16.msra.mxu0 %v936_v54  ;;  %744 = vmatpush1.bf16.msra.mxu1 %v938_v55  ;;  %v975_v54 = vcombine.high %v71_v48, %v79_v49  ;;  %v991_v55 = vcombine.high %v1165_v14, %v1170_v15  ;;  %v525_v61 = vand.u32 %v988_v57, %v1092_v38 }
  0x33   :  { %704 = vmatprep.subr.bf16.mxu0 %v953_v56  ;;  %745 = vmatprep.subr.bf16.mxu1 %v955_v60  ;;  %v972_v56 = vcombine.low %v70_v43, %v78_v45 }
  0x34   :  { %v534_v60 = vand.u32 %v991_v55, %v1092_v38 }
  0x36   :  { %705 = vmatpush1.bf16.msra.mxu0 %v952_v4  ;;  %746 = vmatpush1.bf16.msra.mxu1 %v954_v5 }
  0x37   :  { %706 = vmatprep.subr.bf16.mxu0 %v969_v6  ;;  %747 = vmatprep.subr.bf16.mxu1 %v971_v8 }
  0x3a   :  { %707 = vmatpush1.bf16.msra.mxu0 %v968_v10  ;;  %748 = vmatpush1.bf16.msra.mxu1 %v970_v12 }
  0x3b   :  { %708 = vmatprep.subr.bf16.mxu0 %v516_v13  ;;  %749 = vmatprep.subr.bf16.mxu1 %v522_v17 }
  0x3e   :  { %709 = vmatpush1.bf16.msra.mxu0 %v513_v22  ;;  %750 = vmatpush1.bf16.msra.mxu1 %v519_v23 }
  0x3f   :  { %782 = vmatprep.subr.bf16.mxu0 %v925_v24  ;;  %823 = vmatprep.subr.bf16.mxu1 %v927_v25 }
  0x41   :  { %996 = vmatmul.mubr.msk.bf16.vlgmr.msra.gmra.mrb[8].mxu0 %vm480_vm2, %v1125_v58  ;;  %997 = vmatmul.mubr.msk.bf16.vlgmr.msra.gmra.mrb[8].mxu1 %vm480_vm2, %v1125_v58 }
  0x42   :  { %783 = vmatpush1.bf16.msra.mxu0 %v924_v31  ;;  %824 = vmatpush1.bf16.msra.mxu1 %v926_v32 }
  0x43   :  { %784 = vmatprep.subr.bf16.mxu0 %v941_v33  ;;  %825 = vmatprep.subr.bf16.mxu1 %v943_v34 }
  0x44   :  { %814 = vmatprep.mubr.bf16.mxu0 %v1007_v3  ;;  %855 = vmatprep.mubr.bf16.mxu1 %v1007_v3  ;;  %v528_v3 = vand.u32 %v989_v53, %v1092_v38 }
  0x46   :  { %785 = vmatpush1.bf16.msra.mxu0 %v940_v40  ;;  %826 = vmatpush1.bf16.msra.mxu1 %v942_v41 }
  0x47   :  { %786 = vmatprep.subr.bf16.mxu0 %v957_v42  ;;  %827 = vmatprep.subr.bf16.mxu1 %v959_v44 }
  0x4a   :  { %787 = vmatpush1.bf16.msra.mxu0 %v956_v50  ;;  %828 = vmatpush1.bf16.msra.mxu1 %v958_v51 }
  0x4b   :  { %788 = vmatprep.subr.bf16.mxu0 %v973_v52  ;;  %829 = vmatprep.subr.bf16.mxu1 %v975_v54 }
  0x4e   :  { %789 = vmatpush1.bf16.msra.mxu0 %v972_v56  ;;  %830 = vmatpush1.bf16.msra.mxu1 %v974_v59 }
  0x4f   :  { %790 = vmatprep.subr.bf16.mxu0 %v528_v3  ;;  %831 = vmatprep.subr.bf16.mxu1 %v534_v60 }
  0x52   :  { %791 = vmatpush1.bf16.msra.mxu0 %v525_v61  ;;  %832 = vmatpush1.bf16.msra.mxu1 %v1185_v26 }
  0x55   :  { %998 = vmatmul.mubr.msk.bf16.vlgmr.msra.gmra.mrb[12].mxu0 %vm480_vm2, %v1125_v58  ;;  %999 = vmatmul.mubr.msk.bf16.vlgmr.msra.gmra.mrb[12].mxu1 %vm480_vm2, %v1125_v58 }
  0x8c   :  { %v880_v25 = vpop.permute.xlu0 %879 }
  0xec   :  { %v570_v14 = vpop.f32.mrb[0].mxu0  ;;  %v611_v15 = vpop.f32.mrb[0].mxu1 }
  0xed   :  { %v572_v62 = vpop.f32.mrb[1].mxu0  ;;  %v613_v63 = vpop.f32.mrb[1].mxu1 }
  0xee   :  { %v574_v0 = vpop.f32.mrb[2].mxu0  ;;  %v615_v1 = vpop.f32.mrb[2].mxu1 }
  0xef   :  { %v575_v2 = vpop.f32.mrb[3].mxu0  ;;  %v616_v38 = vpop.f32.mrb[3].mxu1 }
 0x100   :  { %v652_v4 = vpop.f32.mrb[4].mxu0  ;;  %v693_v6 = vpop.f32.mrb[4].mxu1 }
 0x101   :  { %v864_v5 = vmax.f32 %v570_v14, %v652_v4  ;;  %v654_v7 = vpop.f32.mrb[5].mxu0  ;;  %v866_v8 = vmax.f32 %v611_v15, %v693_v6  ;;  %v695_v9 = vpop.f32.mrb[5].mxu1 }
 0x102   :  { %v865_v26 = vmax.f32 %v572_v62, %v654_v7  ;;  %v656_v10 = vpop.f32.mrb[6].mxu0  ;;  %v867_v11 = vmax.f32 %v613_v63, %v695_v9  ;;  %v697_v12 = vpop.f32.mrb[6].mxu1 }
 0x103   :  { %v657_v13 = vpop.f32.mrb[7].mxu0  ;;  %v698_v58 = vpop.f32.mrb[7].mxu1 }
 0x114   :  { %v734_v16 = vpop.f32.mrb[8].mxu0  ;;  %v775_v17 = vpop.f32.mrb[8].mxu1 }
 0x115   :  { %v736_v18 = vpop.f32.mrb[9].mxu0  ;;  %v777_v19 = vpop.f32.mrb[9].mxu1 }
 0x116   :  { %v738_v20 = vpop.f32.mrb[10].mxu0  ;;  %v779_v21 = vpop.f32.mrb[10].mxu1 }
 0x117   :  { %v739_v22 = vpop.f32.mrb[11].mxu0  ;;  %v780_v23 = vpop.f32.mrb[11].mxu1 }
 0x128   :  { %v816_v24 = vpop.f32.mrb[12].mxu0  ;;  %v857_v28 = vpop.f32.mrb[12].mxu1 }
 0x129   :  { %v868_v27 = vmax.f32 %v734_v16, %v816_v24  ;;  %v818_v29 = vpop.f32.mrb[13].mxu0  ;;  %v870_v30 = vmax.f32 %v775_v17, %v857_v28  ;;  %v859_v32 = vpop.f32.mrb[13].mxu1 }
 0x12a   :  { %v869_v31 = vmax.f32 %v736_v18, %v818_v29  ;;  %v820_v33 = vpop.f32.mrb[14].mxu0  ;;  %v871_v35 = vmax.f32 %v777_v19, %v859_v32  ;;  %v861_v36 = vpop.f32.mrb[14].mxu1 }
 0x12b   :  { %v872_v34 = vmax.f32 %v864_v5, %v868_v27  ;;  %v821_v37 = vpop.f32.mrb[15].mxu0  ;;  %v874_v39 = vmax.f32 %v866_v8, %v870_v30  ;;  %v862_v41 = vpop.f32.mrb[15].mxu1 }
 0x12c   :  { %v873_v40 = vmax.f32 %v865_v26, %v869_v31  ;;  %v875_v42 = vmax.f32 %v867_v11, %v871_v35 }
 0x12d   :  { %v882_v43 = vadd.f32 %v880_v25, %v872_v34  ;;  %v884_v45 = vadd.f32 %v880_v25, %v874_v39 }
 0x12e   :  { %v883_v44 = vadd.f32 %v880_v25, %v873_v40  ;;  %v885_v46 = vadd.f32 %v880_v25, %v875_v42 }
 0x12f   :  { %v886_v47 = vmax.f32 %v882_v43, 0.0  ;;  %v888_v49 = vmax.f32 %v884_v45, 0.0 }
 0x130   :  { %v887_v48 = vmax.f32 %v883_v44, 0.0  ;;  %v889_v50 = vmax.f32 %v885_v46, 0.0 }
 0x132   :  { %v1002_v51 = vpack.c.bf16 %v887_v48, %v886_v47  ;;  %v1003_v52 = vpack.c.bf16 %v889_v50, %v888_v49 }
 0x134   :  { %906 = vst [vmem:[%s1340_s3] sm:$0x77] %v1002_v51  ;;  %907 = vst [vmem:[%s1340_s3 + $0x8] sm:$0x77] %v1003_v52 }

// kernel: net_forward.3
= control target key start
LH: loop header
LB: loop body
LE: loop exit
PB: predicated region body
PF: predicated region fallthrough
CT: control target
= control target key end

     0   :  { %v3087_v8 = vmov 0   ;;  %vm501_vm0 = vcmask 179200   ;;  %vm505_vm1 = vcmask 1042432   ;;  %s3973_s0 = inlined_call_operand.vmem [shape: bf16[150,1024], index: 0, kind: input, shape index: {}]   ;;  %s3974_s1 = inlined_call_operand.vmem [shape: bf16[16,150], index: 1, kind: input, shape index: {}]   ;;  %s3975_s2 = inlined_call_operand.vmem [shape: f32[16,1], index: 2, kind: input, shape index: {}]   ;;  %s3976_s3 = inlined_call_operand.vmem [shape: bf16[2048,120], index: 3, kind: input, shape index: {}]   ;;  %s3977_s4 = inlined_call_operand.vmem [shape: f32[1,120], index: 4, kind: input, shape index: {}]   ;;  %s3978_s5 = inlined_call_operand.vmem [shape: bf16[120,84], index: 5, kind: input, shape index: {}]   ;;  %s3979_s6 = inlined_call_operand.vmem [shape: f32[1,84], index: 6, kind: input, shape index: {}]   ;;  %s3980_s7 = inlined_call_operand.vmem [shape: bf16[84,10], index: 7, kind: input, shape index: {}]   ;;  %s3981_s8 = inlined_call_operand.vmem [shape: f32[1,10], index: 8, kind: input, shape index: {}]   ;;  %s3982_s9 = inlined_call_operand.hbm [shape: f32[2,10], index: 9, kind: output, shape index: {}]  }
   0x1   :  { %v36_v0 = vld [vmem:[%s3973_s0] sm:$0xff]  ;;  %v37_v2 = vld [vmem:[%s3973_s0 + $0x8] sm:$0xff]  ;;  %2909 = vset.pattern.permute.xlu0 %v3087_v8 }
   0x2   :  { %v40_v1 = vld [vmem:[%s3973_s0 + $0x20] sm:$0xff]  ;;  %v41_v4 = vld [vmem:[%s3973_s0 + $0x28] sm:$0xff] }
   0x3   :  { %v2431_v3 = vcombine.high %v36_v0, %v40_v1  ;;  %v2430_v5 = vcombine.low %v36_v0, %v40_v1  ;;  %v44_v6 = vld [vmem:[%s3973_s0 + $0x40] sm:$0xff]  ;;  %v2433_v9 = vcombine.high %v37_v2, %v41_v4  ;;  %v2432_v10 = vcombine.low %v37_v2, %v41_v4  ;;  %v45_v12 = vld [vmem:[%s3973_s0 + $0x48] sm:$0xff] }
   0x4   :  { %v48_v7 = vld [vmem:[%s3973_s0 + $0x60] sm:$0xff]  ;;  %v49_v13 = vld [vmem:[%s3973_s0 + $0x68] sm:$0xff] }
   0x5   :  { %v2439_v11 = vcombine.high %v44_v6, %v48_v7  ;;  %v52_v14 = vld [vmem:[%s3973_s0 + $0x80] sm:$0xff]  ;;  %530 = vmatprep.subr.bf16.mxu0 %v2431_v3  ;;  %v2441_v15 = vcombine.high %v45_v12, %v49_v13  ;;  %v53_v17 = vld [vmem:[%s3973_s0 + $0x88] sm:$0xff]  ;;  %573 = vmatprep.subr.bf16.mxu1 %v2433_v9  ;;  %v2438_v19 = vcombine.low %v44_v6, %v48_v7  ;;  %v3276_v9 = vld [vmem:[%s3973_s0 + $0x250] sm:$0x77] }
   0x6   :  { %v56_v16 = vld [vmem:[%s3973_s0 + $0xa0] sm:$0xff]  ;;  %v57_v18 = vld [vmem:[%s3973_s0 + $0xa8] sm:$0xff]  ;;  %531 = vmatpush1.bf16.msra.mxu0 %v2430_v5  ;;  %574 = vmatpush1.bf16.msra.mxu1 %v2432_v10  ;;  %v2440_v20 = vcombine.low %v45_v12, %v49_v13  ;;  %v3281_v10 = vld [vmem:[%s3973_s0 + $0x258] sm:$0x77]  ;;  %v2506_v13 = vcombine.low %v3276_v9, %v3276_v9 }
   0x7   :  { %532 = vmatprep.subr.bf16.mxu0 %v2439_v11  ;;  %v2447_v21 = vcombine.high %v52_v14, %v56_v16  ;;  %575 = vmatprep.subr.bf16.mxu1 %v2441_v15  ;;  %v2449_v22 = vcombine.high %v53_v17, %v57_v18  ;;  %v60_v23 = vld [vmem:[%s3973_s0 + $0xc0] sm:$0xff]  ;;  %v61_v25 = vld [vmem:[%s3973_s0 + $0xc8] sm:$0xff]  ;;  %v2446_v27 = vcombine.low %v52_v14, %v56_v16 }
   0x8   :  { %v64_v24 = vld [vmem:[%s3973_s0 + $0xe0] sm:$0xff]  ;;  %v65_v26 = vld [vmem:[%s3973_s0 + $0xe8] sm:$0xff]  ;;  %v2448_v28 = vcombine.low %v53_v17, %v57_v18  ;;  %v2508_v14 = vcombine.low %v3281_v10, %v3281_v10 }
   0x9   :  { %v2455_v29 = vcombine.high %v60_v23, %v64_v24  ;;  %v2457_v30 = vcombine.high %v61_v25, %v65_v26  ;;  %v68_v31 = vld [vmem:[%s3973_s0 + $0x100] sm:$0xff]  ;;  %v69_v33 = vld [vmem:[%s3973_s0 + $0x108] sm:$0xff]  ;;  %v2454_v35 = vcombine.low %v60_v23, %v64_v24  ;;  %v2456_v36 = vcombine.low %v61_v25, %v65_v26  ;;  %v38_v23 = vld [vmem:[%s3973_s0 + $0x10] sm:$0xff] }
   0xa   :  { %533 = vmatpush1.bf16.msra.mxu0 %v2438_v19  ;;  %576 = vmatpush1.bf16.msra.mxu1 %v2440_v20  ;;  %v72_v32 = vld [vmem:[%s3973_s0 + $0x120] sm:$0xff]  ;;  %v73_v34 = vld [vmem:[%s3973_s0 + $0x128] sm:$0xff]  ;;  %v3295_v19 = vsel %vm505_vm1, %v2506_v13, 0  ;;  %v3298_v20 = vsel %vm505_vm1, %v2508_v14, 0  ;;  %v42_v24 = vld [vmem:[%s3973_s0 + $0x30] sm:$0xff] }
   0xb   :  { %534 = vmatprep.subr.bf16.mxu0 %v2447_v21  ;;  %577 = vmatprep.subr.bf16.mxu1 %v2449_v22  ;;  %v2463_v37 = vcombine.high %v68_v31, %v72_v32  ;;  %v3204_v38 = vld [vmem:[%s3974_s1 + $0x4] ss:$8 sps:$4 sm:$0xff]   ;;  %v2465_v39 = vcombine.high %v69_v33, %v73_v34  ;;  %v2462_v44 = vcombine.low %v68_v31, %v72_v32  ;;  %v50_v31 = vld [vmem:[%s3973_s0 + $0x70] sm:$0xff]  ;;  %v3326_v32 = vld [vmem:[%s3974_s1] ss:$8 sps:$4 sm:$0xff]  }
   0xc   :  { %v76_v40 = vld [vmem:[%s3973_s0 + $0x140] sm:$0xff]  ;;  %v77_v42 = vld [vmem:[%s3973_s0 + $0x148] sm:$0xff]  ;;  %2511 = vmatprep.mubr.msk.bf16.mxu0 %vm501_vm0, %v3204_v38  ;;  %2513 = vmatprep.mubr.msk.bf16.mxu1 %vm501_vm0, %v3204_v38  ;;  %v2464_v45 = vcombine.low %v69_v33, %v73_v34  ;;  %v2435_v33 = vcombine.high %v38_v23, %v42_v24  ;;  %v47_v34 = vld [vmem:[%s3973_s0 + $0x58] sm:$0xff] }
   0xd   :  { %v80_v41 = vld [vmem:[%s3973_s0 + $0x160] sm:$0xff]  ;;  %v81_v43 = vld [vmem:[%s3973_s0 + $0x168] sm:$0xff]  ;;  %v91_v13 = vld [vmem:[%s3973_s0 + $0x1b8] sm:$0xff] }
   0xe   :  { %535 = vmatpush1.bf16.msra.mxu0 %v2446_v27  ;;  %578 = vmatpush1.bf16.msra.mxu1 %v2448_v28  ;;  %v2471_v46 = vcombine.high %v76_v40, %v80_v41  ;;  %v2473_v47 = vcombine.high %v77_v42, %v81_v43  ;;  %v84_v48 = vld [vmem:[%s3973_s0 + $0x180] sm:$0xff]  ;;  %v85_v50 = vld [vmem:[%s3973_s0 + $0x188] sm:$0xff]  ;;  %v2470_v53 = vcombine.low %v76_v40, %v80_v41  ;;  %v39_v27 = vld [vmem:[%s3973_s0 + $0x18] sm:$0xff] }
   0xf   :  { %536 = vmatprep.subr.bf16.mxu0 %v2455_v29  ;;  %579 = vmatprep.subr.bf16.mxu1 %v2457_v30  ;;  %v88_v49 = vld [vmem:[%s3973_s0 + $0x1a0] sm:$0xff]  ;;  %v89_v51 = vld [vmem:[%s3973_s0 + $0x1a8] sm:$0xff]  ;;  %v2472_v55 = vcombine.low %v77_v42, %v81_v43  ;;  %v43_v28 = vld [vmem:[%s3973_s0 + $0x38] sm:$0xff] }
  0x10   :  { %v3237_v52 = vld [vmem:[%s3973_s0 + $0x240] sm:$0x77]  ;;  %v3242_v54 = vld [vmem:[%s3973_s0 + $0x248] sm:$0x77]  ;;  %v2479_v56 = vcombine.high %v84_v48, %v88_v49  ;;  %v2481_v57 = vcombine.high %v85_v50, %v89_v51  ;;  %v2478_v0 = vcombine.low %v84_v48, %v88_v49  ;;  %v2480_v2 = vcombine.low %v85_v50, %v89_v51  ;;  %v46_v30 = vld [vmem:[%s3973_s0 + $0x50] sm:$0xff] }
  0x11   :  { %v92_v58 = vld [vmem:[%s3973_s0 + $0x1c0] sm:$0xff]  ;;  %v2502_v60 = vcombine.low %v3237_v52, %v3237_v52  ;;  %v93_v61 = vld [vmem:[%s3973_s0 + $0x1c8] sm:$0xff]  ;;  %v2504_v63 = vcombine.low %v3242_v54, %v3242_v54  ;;  %v2503_v26 = vcombine.high %v3237_v52, %v3237_v52  ;;  %v2505_v29 = vcombine.high %v3242_v54, %v3242_v54  ;;  %v58_v40 = vld [vmem:[%s3973_s0 + $0xb0] sm:$0xff] }
  0x12   :  { %537 = vmatpush1.bf16.msra.mxu0 %v2454_v35  ;;  %580 = vmatpush1.bf16.msra.mxu1 %v2456_v36  ;;  %v96_v59 = vld [vmem:[%s3973_s0 + $0x1e0] sm:$0xff]  ;;  %v97_v62 = vld [vmem:[%s3973_s0 + $0x1e8] sm:$0xff]  ;;  %v51_v35 = vld [vmem:[%s3973_s0 + $0x78] sm:$0xff]  ;;  %v2437_v36 = vcombine.high %v39_v27, %v43_v28  ;;  %v2436_v41 = vcombine.low %v39_v27, %v43_v28  ;;  %v2443_v42 = vcombine.high %v46_v30, %v50_v31 }
  0x13   :  { %538 = vmatprep.subr.bf16.mxu0 %v2463_v37  ;;  %581 = vmatprep.subr.bf16.mxu1 %v2465_v39  ;;  %v100_v1 = vld [vmem:[%s3973_s0 + $0x200] sm:$0xff]  ;;  %v2487_v3 = vcombine.high %v92_v58, %v96_v59  ;;  %v101_v5 = vld [vmem:[%s3973_s0 + $0x208] sm:$0xff]  ;;  %v2489_v7 = vcombine.high %v93_v61, %v97_v62  ;;  %v507_v8 = vsel %vm505_vm1, %v2502_v60, 0  ;;  %v513_v12 = vsel %vm505_vm1, %v2504_v63, 0  ;;  %v54_v39 = vld [vmem:[%s3973_s0 + $0x90] sm:$0xff] }
  0x14   :  { %v104_v4 = vld [vmem:[%s3973_s0 + $0x220] sm:$0xff]  ;;  %v105_v6 = vld [vmem:[%s3973_s0 + $0x228] sm:$0xff]  ;;  %v2486_v16 = vcombine.low %v92_v58, %v96_v59  ;;  %v2488_v17 = vcombine.low %v93_v61, %v97_v62  ;;  %v2434_v37 = vcombine.low %v38_v23, %v42_v24  ;;  %v55_v43 = vld [vmem:[%s3973_s0 + $0x98] sm:$0xff]  ;;  %v2444_v49 = vcombine.low %v47_v34, %v51_v35 }
  0x15   :  { %v714_v11 = vld [vmem:[%s3975_s2] sm:$0xff]  ;;  %v715_v15 = vld [vmem:[%s3975_s2 + $0x8] sm:$0xff]  ;;  %v2495_v18 = vcombine.high %v100_v1, %v104_v4  ;;  %v2497_v21 = vcombine.high %v101_v5, %v105_v6  ;;  %v2494_v22 = vcombine.low %v100_v1, %v104_v4  ;;  %v2496_v25 = vcombine.low %v101_v5, %v105_v6  ;;  %v66_v48 = vld [vmem:[%s3973_s0 + $0xf0] sm:$0xff] }
  0x16   :  { %539 = vmatpush1.bf16.msra.mxu0 %v2462_v44  ;;  %582 = vmatpush1.bf16.msra.mxu1 %v2464_v45  ;;  %v59_v44 = vld [vmem:[%s3973_s0 + $0xb8] sm:$0xff]  ;;  %v2445_v45 = vcombine.high %v47_v34, %v51_v35  ;;  %v2451_v50 = vcombine.high %v54_v39, %v58_v40  ;;  %v2450_v54 = vcombine.low %v54_v39, %v58_v40  ;;  %v78_v62 = vld [vmem:[%s3973_s0 + $0x150] sm:$0xff] }
  0x17   :  { %540 = vmatprep.subr.bf16.mxu0 %v2471_v46  ;;  %583 = vmatprep.subr.bf16.mxu1 %v2473_v47  ;;  %v2442_v46 = vcombine.low %v46_v30, %v50_v31  ;;  %v62_v47 = vld [vmem:[%s3973_s0 + $0xd0] sm:$0xff]  ;;  %v63_v51 = vld [vmem:[%s3973_s0 + $0xd8] sm:$0xff] }
  0x18   :  { %718 = vperm.xlu0 %2909, %v714_v11   ;;  %v67_v52 = vld [vmem:[%s3973_s0 + $0xf8] sm:$0xff]  ;;  %v2459_v58 = vcombine.high %v62_v47, %v66_v48  ;;  %v2458_v61 = vcombine.low %v62_v47, %v66_v48  ;;  %v82_v63 = vld [vmem:[%s3973_s0 + $0x170] sm:$0xff] }
  0x19   :  { %v71_v59 = vld [vmem:[%s3973_s0 + $0x118] sm:$0xff]  ;;  %v2461_v60 = vcombine.high %v63_v51, %v67_v52  ;;  %v86_v6 = vld [vmem:[%s3973_s0 + $0x190] sm:$0xff]  ;;  %v2475_v11 = vcombine.high %v78_v62, %v82_v63 }
  0x1a   :  { %541 = vmatpush1.bf16.msra.mxu0 %v2470_v53  ;;  %584 = vmatpush1.bf16.msra.mxu1 %v2472_v55  ;;  %v2453_v53 = vcombine.high %v55_v43, %v59_v44  ;;  %v70_v55 = vld [vmem:[%s3973_s0 + $0x110] sm:$0xff]  ;;  %v99_v23 = vld [vmem:[%s3973_s0 + $0x1f8] sm:$0xff] }
  0x1b   :  { %542 = vmatprep.subr.bf16.mxu0 %v2479_v56  ;;  %585 = vmatprep.subr.bf16.mxu1 %v2481_v57  ;;  %v74_v56 = vld [vmem:[%s3973_s0 + $0x130] sm:$0xff]  ;;  %v2452_v57 = vcombine.low %v55_v43, %v59_v44  ;;  %v103_v30 = vld [vmem:[%s3973_s0 + $0x218] sm:$0xff] }
  0x1c   :  { %723 = vperm.xlu0 %2909, %v715_v15   ;;  %v2467_v1 = vcombine.high %v70_v55, %v74_v56  ;;  %v2466_v5 = vcombine.low %v70_v55, %v74_v56  ;;  %v2474_v15 = vcombine.low %v78_v62, %v82_v63  ;;  %v106_v27 = vld [vmem:[%s3973_s0 + $0x230] sm:$0xff]  ;;  %v107_v31 = vld [vmem:[%s3973_s0 + $0x238] sm:$0xff] }
  0x1d   :  { %v2500_v40 = vcombine.low %v103_v30, %v107_v31 }
  0x1e   :  { %543 = vmatpush1.bf16.msra.mxu0 %v2478_v0  ;;  %586 = vmatpush1.bf16.msra.mxu1 %v2480_v2  ;;  %v2460_v0 = vcombine.low %v63_v51, %v67_v52  ;;  %v79_v2 = vld [vmem:[%s3973_s0 + $0x158] sm:$0xff] }
  0x1f   :  { %544 = vmatprep.subr.bf16.mxu0 %v2487_v3  ;;  %587 = vmatprep.subr.bf16.mxu1 %v2489_v7  ;;  %v83_v3 = vld [vmem:[%s3973_s0 + $0x178] sm:$0xff]  ;;  %v90_v7 = vld [vmem:[%s3973_s0 + $0x1b0] sm:$0xff] }
  0x20   :  { %v2477_v14 = vcombine.high %v79_v2, %v83_v3 }
  0x22   :  { %545 = vmatpush1.bf16.msra.mxu0 %v2486_v16  ;;  %588 = vmatpush1.bf16.msra.mxu1 %v2488_v17  ;;  %v94_v16 = vld [vmem:[%s3973_s0 + $0x1d0] sm:$0xff] }
  0x23   :  { %546 = vmatprep.subr.bf16.mxu0 %v2495_v18  ;;  %589 = vmatprep.subr.bf16.mxu1 %v2497_v21  ;;  %v98_v17 = vld [vmem:[%s3973_s0 + $0x1f0] sm:$0xff]  ;;  %v2476_v18 = vcombine.low %v79_v2, %v83_v3  ;;  %v2483_v21 = vcombine.high %v86_v6, %v90_v7 }
  0x24   :  { %v2490_v34 = vcombine.low %v94_v16, %v98_v17 }
  0x26   :  { %547 = vmatpush1.bf16.msra.mxu0 %v2494_v22  ;;  %590 = vmatpush1.bf16.msra.mxu1 %v2496_v25  ;;  %v95_v22 = vld [vmem:[%s3973_s0 + $0x1d8] sm:$0xff]  ;;  %v2482_v25 = vcombine.low %v86_v6, %v90_v7 }
  0x27   :  { %2510 = vmatprep.subr.msk.bf16.mxu0 %vm505_vm1, %v2503_v26  ;;  %2512 = vmatprep.subr.msk.bf16.mxu1 %vm505_vm1, %v2505_v29  ;;  %v102_v26 = vld [vmem:[%s3973_s0 + $0x210] sm:$0xff]  ;;  %v2491_v29 = vcombine.high %v94_v16, %v98_v17  ;;  %v2492_v35 = vcombine.low %v95_v22, %v99_v23 }
  0x28   :  { %v2498_v39 = vcombine.low %v102_v26, %v106_v27 }
  0x2a   :  { %549 = vmatpush1.bf16.msra.mxu0 %v507_v8  ;;  %592 = vmatpush1.bf16.msra.mxu1 %v513_v12  ;;  %v87_v12 = vld [vmem:[%s3973_s0 + $0x198] sm:$0xff] }
  0x2b   :  { %616 = vmatprep.subr.bf16.mxu0 %v2435_v33  ;;  %659 = vmatprep.subr.bf16.mxu1 %v2437_v36  ;;  %v2485_v24 = vcombine.high %v87_v12, %v91_v13  ;;  %v2484_v28 = vcombine.low %v87_v12, %v91_v13  ;;  %v2493_v33 = vcombine.high %v95_v22, %v99_v23 }
  0x2c   :  { %v2499_v36 = vcombine.high %v102_v26, %v106_v27 }
  0x2d   :  { %563 = vmatmul.mubr.bf16.vlgmr.msra.gmra.mrb[0].mxu0 %v3326_v32  ;;  %606 = vmatmul.mubr.bf16.vlgmr.msra.gmra.mrb[0].mxu1 %v3326_v32 }
  0x2e   :  { %617 = vmatpush1.bf16.msra.mxu0 %v2434_v37  ;;  %660 = vmatpush1.bf16.msra.mxu1 %v2436_v41  ;;  %v2501_v37 = vcombine.high %v103_v30, %v107_v31  ;;  %v2507_v41 = vcombine.high %v3276_v9, %v3276_v9 }
  0x2f   :  { %618 = vmatprep.subr.bf16.mxu0 %v2443_v42  ;;  %661 = vmatprep.subr.bf16.mxu1 %v2445_v45  ;;  %v2509_v42 = vcombine.high %v3281_v10, %v3281_v10 }
  0x30   :  { %2515 = vmatprep.mubr.msk.bf16.mxu0 %vm501_vm0, %v3204_v38  ;;  %2517 = vmatprep.mubr.msk.bf16.mxu1 %vm501_vm0, %v3204_v38  ;;  %v75_v38 = vld [vmem:[%s3973_s0 + $0x138] sm:$0xff] }
  0x31   :  { %v2469_v4 = vcombine.high %v71_v59, %v75_v38  ;;  %v2468_v8 = vcombine.low %v71_v59, %v75_v38 }
  0x32   :  { %619 = vmatpush1.bf16.msra.mxu0 %v2442_v46  ;;  %662 = vmatpush1.bf16.msra.mxu1 %v2444_v49 }
  0x33   :  { %620 = vmatprep.subr.bf16.mxu0 %v2451_v50  ;;  %663 = vmatprep.subr.bf16.mxu1 %v2453_v53 }
  0x36   :  { %621 = vmatpush1.bf16.msra.mxu0 %v2450_v54  ;;  %664 = vmatpush1.bf16.msra.mxu1 %v2452_v57 }
  0x37   :  { %622 = vmatprep.subr.bf16.mxu0 %v2459_v58  ;;  %665 = vmatprep.subr.bf16.mxu1 %v2461_v60 }
  0x3a   :  { %623 = vmatpush1.bf16.msra.mxu0 %v2458_v61  ;;  %666 = vmatpush1.bf16.msra.mxu1 %v2460_v0 }
  0x3b   :  { %624 = vmatprep.subr.bf16.mxu0 %v2467_v1  ;;  %667 = vmatprep.subr.bf16.mxu1 %v2469_v4 }
  0x3e   :  { %625 = vmatpush1.bf16.msra.mxu0 %v2466_v5  ;;  %668 = vmatpush1.bf16.msra.mxu1 %v2468_v8 }
  0x3f   :  { %626 = vmatprep.subr.bf16.mxu0 %v2475_v11  ;;  %669 = vmatprep.subr.bf16.mxu1 %v2477_v14 }
  0x42   :  { %627 = vmatpush1.bf16.msra.mxu0 %v2474_v15  ;;  %670 = vmatpush1.bf16.msra.mxu1 %v2476_v18 }
  0x43   :  { %628 = vmatprep.subr.bf16.mxu0 %v2483_v21  ;;  %671 = vmatprep.subr.bf16.mxu1 %v2485_v24 }
  0x46   :  { %629 = vmatpush1.bf16.msra.mxu0 %v2482_v25  ;;  %672 = vmatpush1.bf16.msra.mxu1 %v2484_v28 }
  0x47   :  { %630 = vmatprep.subr.bf16.mxu0 %v2491_v29  ;;  %673 = vmatprep.subr.bf16.mxu1 %v2493_v33 }
  0x4a   :  { %631 = vmatpush1.bf16.msra.mxu0 %v2490_v34  ;;  %674 = vmatpush1.bf16.msra.mxu1 %v2492_v35 }
  0x4b   :  { %632 = vmatprep.subr.bf16.mxu0 %v2499_v36  ;;  %675 = vmatprep.subr.bf16.mxu1 %v2501_v37 }
  0x4e   :  { %633 = vmatpush1.bf16.msra.mxu0 %v2498_v39  ;;  %676 = vmatpush1.bf16.msra.mxu1 %v2500_v40 }
  0x4f   :  { %2514 = vmatprep.subr.msk.bf16.mxu0 %vm505_vm1, %v2507_v41  ;;  %2516 = vmatprep.subr.msk.bf16.mxu1 %vm505_vm1, %v2509_v42 }
  0x52   :  { %635 = vmatpush1.bf16.msra.mxu0 %v3295_v19  ;;  %678 = vmatpush1.bf16.msra.mxu1 %v3298_v20 }
  0x55   :  { %649 = vmatmul.mubr.bf16.vlgmr.msra.gmra.mrb[4].mxu0 %v3326_v32  ;;  %692 = vmatmul.mubr.bf16.vlgmr.msra.gmra.mrb[4].mxu1 %v3326_v32 }
  0x56   :  { %14 = vsyncpa [#allocation3], 0  ;;  %v2921_v9 = vld [vmem:[%s3976_s3 + $0x40] sm:$0xff]   ;;  %v2925_v20 = vld [vmem:[%s3976_s3 + $0x48] sm:$0xff]   ;;  %vm810_vm2 = vcmask 1040384   ;;  %vm2267_vm3 = vcmask 1043456  }
  0x57   :  { %v2922_v10 = vld [vmem:[%s3976_s3] sm:$0xff]   ;;  %2677 = vmatprep.subr.bf16.mxu0 %v2921_v9  ;;  %v2927_v32 = vld [vmem:[%s3976_s3 + $0xc8] sm:$0xff]   ;;  %v2929_v46 = vld [vmem:[%s3976_s3 + $0x50] sm:$0xff]   ;;  %vm3089_vm4 = vmmov 0   ;;  %vm2263_vm5 = vcmask 982016   ;;  %vm2368_vm6 = vcmask 1041408  }
  0x58   :  { %v2923_v43 = vld [vmem:[%s3976_s3 + $0xc0] sm:$0xff]   ;;  %2678 = vmatpush3.bf16.msra.mxu0 %v2922_v10  ;;  %v2926_v44 = vld [vmem:[%s3976_s3 + $0x8] sm:$0xff]   ;;  %v2931_v47 = vld [vmem:[%s3976_s3 + $0xd0] sm:$0xff]   ;;  %vm2364_vm7 = vcmask 687104   ;;  %s3090_s2 = smov [#allocation2]   ;;  %vm2412_vm8 = vcmask 74752  }
  0x59   :  { %v2924_v19 = vld [vmem:[%s3976_s3 + $0x80] sm:$0xff]   ;;  %2699 = vmatprep.subr.bf16.mxu1 %v2923_v43  ;;  %v2928_v45 = vld [vmem:[%s3976_s3 + $0x88] sm:$0xff]   ;;  %2679 = vmatprep.subr.bf16.mxu0 %v2925_v20  ;;  %v2930_v48 = vld [vmem:[%s3976_s3 + $0x10] sm:$0xff]   ;;  %s2420_s13 = sshll.u32 %s3090_s2, 4  ;;  %s2421_s13 = int_to_ptr.vmem [resolvable:$true] %s2420_s13 }
  0x5a   :  { %2700 = vmatpush3.bf16.msra.mxu1 %v2924_v19  ;;  %v2932_v49 = vld [vmem:[%s3976_s3 + $0x90] sm:$0xff]   ;;  %v2933_v50 = vld [vmem:[%s3976_s3 + $0x58] sm:$0xff]   ;;  %v2937_v54 = vld [vmem:[%s3976_s3 + $0x60] sm:$0xff]   ;;  %p3068_p1 = scmp.lt.s32.totalorder %s2421_s13, %s2421_s13 }
  0x5b   :  { %2701 = vmatprep.subr.bf16.mxu1 %v2927_v32  ;;  %v2935_v51 = vld [vmem:[%s3976_s3 + $0xd8] sm:$0xff]   ;;  %v2939_v55 = vld [vmem:[%s3976_s3 + $0xe0] sm:$0xff]   ;;  %v2941_v58 = vld [vmem:[%s3976_s3 + $0x68] sm:$0xff]  }
  0x5c   :  { %2680 = vmatpush3.bf16.msra.mxu0 %v2926_v44  ;;  %v2934_v52 = vld [vmem:[%s3976_s3 + $0x18] sm:$0xff]   ;;  %v2938_v56 = vld [vmem:[%s3976_s3 + $0x20] sm:$0xff]   ;;  %v2942_v59 = vld [vmem:[%s3976_s3 + $0x28] sm:$0xff]  }
  0x5d   :  { %2681 = vmatprep.subr.bf16.mxu0 %v2929_v46  ;;  %v2936_v53 = vld [vmem:[%s3976_s3 + $0x98] sm:$0xff]   ;;  %v2940_v57 = vld [vmem:[%s3976_s3 + $0xa0] sm:$0xff]   ;;  %v2943_v38 = vld [vmem:[%s3976_s3 + $0xe8] sm:$0xff]  }
  0x5e   :  { %2702 = vmatpush3.bf16.msra.mxu1 %v2928_v45  ;;  %v2944_v60 = vld [vmem:[%s3976_s3 + $0xa8] sm:$0xff]   ;;  %v2945_v61 = vld [vmem:[%s3976_s3 + $0x70] sm:$0xff]   ;;  %v2949_v1 = vld [vmem:[%s3976_s3 + $0x78] sm:$0xff]  }
  0x5f   :  { %2703 = vmatprep.subr.bf16.mxu1 %v2931_v47  ;;  %v2946_v62 = vld [vmem:[%s3976_s3 + $0x30] sm:$0xff]   ;;  %v2950_v2 = vld [vmem:[%s3976_s3 + $0x38] sm:$0xff]   ;;  %v2953_v5 = vld [vmem:[%s3976_s3 + $0x140] sm:$0xff]  }
  0x60   :  { %2682 = vmatpush3.bf16.msra.mxu0 %v2930_v48  ;;  %v2947_v63 = vld [vmem:[%s3976_s3 + $0xf0] sm:$0xff]   ;;  %v2951_v3 = vld [vmem:[%s3976_s3 + $0xf8] sm:$0xff]   ;;  %v2955_v6 = vld [vmem:[%s3976_s3 + $0x1c0] sm:$0xff]  }
  0x61   :  { %2683 = vmatprep.subr.bf16.mxu0 %v2933_v50  ;;  %v2948_v0 = vld [vmem:[%s3976_s3 + $0xb0] sm:$0xff]   ;;  %v2952_v4 = vld [vmem:[%s3976_s3 + $0xb8] sm:$0xff]  }
  0x62   :  { %2704 = vmatpush3.bf16.msra.mxu1 %v2932_v49 }
  0x63   :  { %2705 = vmatprep.subr.bf16.mxu1 %v2935_v51 }
  0x64   :  { %2684 = vmatpush3.bf16.msra.mxu0 %v2934_v52 }
  0x65   :  { %2685 = vmatprep.subr.bf16.mxu0 %v2937_v54 }
  0x66   :  { %2706 = vmatpush3.bf16.msra.mxu1 %v2936_v53 }
  0x67   :  { %2707 = vmatprep.subr.bf16.mxu1 %v2939_v55 }
  0x68   :  { %2686 = vmatpush3.bf16.msra.mxu0 %v2938_v56 }
  0x69   :  { %2687 = vmatprep.subr.bf16.mxu0 %v2941_v58 }
  0x6a   :  { %2708 = vmatpush3.bf16.msra.mxu1 %v2940_v57 }
  0x6b   :  { %2709 = vmatprep.subr.bf16.mxu1 %v2943_v38 }
  0x6c   :  { %2688 = vmatpush3.bf16.msra.mxu0 %v2942_v59  ;;  %v2954_v59 = vld [vmem:[%s3976_s3 + $0x100] sm:$0xff]  }
  0x6d   :  { %2689 = vmatprep.subr.bf16.mxu0 %v2945_v61 }
  0x6e   :  { %2710 = vmatpush3.bf16.msra.mxu1 %v2944_v60 }
  0x6f   :  { %2711 = vmatprep.subr.bf16.mxu1 %v2947_v63 }
  0x70   :  { %2690 = vmatpush3.bf16.msra.mxu0 %v2946_v62 }
  0x71   :  { %2691 = vmatprep.subr.bf16.mxu0 %v2949_v1 }
  0x72   :  { %2712 = vmatpush3.bf16.msra.mxu1 %v2948_v0  ;;  %v2956_v0 = vld [vmem:[%s3976_s3 + $0x180] sm:$0xff]  }
  0x73   :  { %2713 = vmatprep.subr.bf16.mxu1 %v2951_v3  ;;  %v2957_v3 = vld [vmem:[%s3976_s3 + $0x148] sm:$0xff]  }
  0x74   :  { %2692 = vmatpush3.bf16.msra.mxu0 %v2950_v2 }
  0x75   :  { %2721 = vmatprep.subr.bf16.mxu0 %v2953_v5 }
  0x76   :  { %2714 = vmatpush3.bf16.msra.mxu1 %v2952_v4  ;;  %v2959_v4 = vld [vmem:[%s3976_s3 + $0x1c8] sm:$0xff]  }
  0x77   :  { %2743 = vmatprep.subr.bf16.mxu1 %v2955_v6 }
  0x97   :  { %v719_v23 = vpop.permute.xlu0 %718 }
  0x9b   :  { %v724_v9 = vpop.permute.xlu0 %723 }
 0x100   :  { %v564_v7 = vpop.f32.mrb[0].mxu0  ;;  %v607_v8 = vpop.f32.mrb[0].mxu1 }
 0x101   :  { %v566_v11 = vpop.f32.mrb[1].mxu0  ;;  %v702_v12 = vmax.f32 %v564_v7, %v607_v8  ;;  %v609_v13 = vpop.f32.mrb[1].mxu1 }
 0x102   :  { %v568_v14 = vpop.f32.mrb[2].mxu0  ;;  %v703_v15 = vmax.f32 %v566_v11, %v609_v13  ;;  %v611_v16 = vpop.f32.mrb[2].mxu1 }
 0x103   :  { %v570_v17 = vpop.f32.mrb[3].mxu0  ;;  %v704_v18 = vmax.f32 %v568_v14, %v611_v16  ;;  %v613_v21 = vpop.f32.mrb[3].mxu1  ;;  %v2958_v14 = vld [vmem:[%s3976_s3 + $0x108] sm:$0xff]  }
 0x104   :  { %v705_v22 = vmax.f32 %v570_v17, %v613_v21  ;;  %v2960_v21 = vld [vmem:[%s3976_s3 + $0x188] sm:$0xff]  }
 0x128   :  { %v650_v24 = vpop.f32.mrb[4].mxu0  ;;  %v693_v25 = vpop.f32.mrb[4].mxu1 }
 0x129   :  { %v652_v26 = vpop.f32.mrb[5].mxu0  ;;  %v706_v27 = vmax.f32 %v650_v24, %v693_v25  ;;  %v695_v28 = vpop.f32.mrb[5].mxu1  ;;  %v2963_v25 = vld [vmem:[%s3976_s3 + $0x1d0] sm:$0xff]  }
 0x12a   :  { %v654_v29 = vpop.f32.mrb[6].mxu0  ;;  %v707_v30 = vmax.f32 %v652_v26, %v695_v28  ;;  %v697_v31 = vpop.f32.mrb[6].mxu1 }
 0x12b   :  { %v656_v33 = vpop.f32.mrb[7].mxu0  ;;  %v710_v34 = vmax.f32 %v702_v12, %v706_v27  ;;  %v708_v35 = vmax.f32 %v654_v29, %v697_v31  ;;  %v699_v36 = vpop.f32.mrb[7].mxu1  ;;  %v2962_v31 = vld [vmem:[%s3976_s3 + $0x110] sm:$0xff]  }
 0x12c   :  { %v711_v37 = vmax.f32 %v703_v15, %v707_v30  ;;  %v709_v39 = vmax.f32 %v656_v33, %v699_v36  ;;  %v2965_v36 = vld [vmem:[%s3976_s3 + $0x158] sm:$0xff]  }
 0x12d   :  { %v726_v40 = vadd.f32 %v719_v23, %v710_v34  ;;  %v712_v41 = vmax.f32 %v704_v18, %v708_v35  ;;  %v2964_v35 = vld [vmem:[%s3976_s3 + $0x190] sm:$0xff]  }
 0x12e   :  { %v727_v42 = vadd.f32 %v719_v23, %v711_v37  ;;  %v713_v10 = vmax.f32 %v705_v22, %v709_v39  ;;  %v2961_v22 = vld [vmem:[%s3976_s3 + $0x150] sm:$0xff]  }
 0x12f   :  { %v730_v43 = vmax.f32 %v726_v40, 0.0  ;;  %v728_v19 = vadd.f32 %v724_v9, %v712_v41 }
 0x130   :  { %v731_v20 = vmax.f32 %v727_v42, 0.0  ;;  %v729_v32 = vadd.f32 %v724_v9, %v713_v10  ;;  %v2967_v42 = vld [vmem:[%s3976_s3 + $0x1d8] sm:$0xff]  }
 0x131   :  { %v3537_v44 = vmax.f32 %v728_v19, 0.0  ;;  %v735_v45 = vrot.slane %v730_v43, 1  ;;  %v739_v46 = vrot.slane %v730_v43, 3  ;;  %v737_v47 = vrot.slane %v730_v43, 2 }
 0x132   :  { %v3539_v48 = vmax.f32 %v729_v32, 0.0  ;;  %v771_v49 = vrot.slane %v731_v20, 7  ;;  %v2520_v50 = vrot.slane %v731_v20, 10  ;;  %v2519_v51 = vrot.slane %v731_v20, 9  ;;  %v2966_v32 = vld [vmem:[%s3976_s3 + $0x118] sm:$0xff]  }
 0x133   :  { %v812_v52 = vsel %vm810_vm2, %v735_v45, %v731_v20  ;;  %v743_v53 = vrot.slane %v730_v43, 5  ;;  %v2522_v54 = vrot.slane %v731_v20, 12  ;;  %v747_v55 = vrot.slane %v730_v43, 7 }
 0x134   :  { %v828_v56 = vpack.c.bf16 %v812_v52, %v812_v52  ;;  %v811_v57 = vsel %vm810_vm2, %v730_v43, %v771_v49  ;;  %v814_v58 = vsel %vm810_vm2, %v739_v46, %v2520_v50  ;;  %v813_v38 = vsel %vm810_vm2, %v737_v47, %v2519_v51  ;;  %v2969_v46 = vld [vmem:[%s3976_s3 + $0x160] sm:$0xff]   ;;  %v2973_v50 = vld [vmem:[%s3976_s3 + $0x168] sm:$0xff]  }
 0x135   :  { %v827_v60 = vpack.c.bf16 %v811_v57, %v811_v57  ;;  %v830_v61 = vpack.c.bf16 %v814_v58, %v814_v58  ;;  %v829_v62 = vpack.c.bf16 %v813_v38, %v813_v38  ;;  %v816_v63 = vsel %vm810_vm2, %v743_v53, %v2522_v54  ;;  %v2971_v47 = vld [vmem:[%s3976_s3 + $0x1e0] sm:$0xff]   ;;  %v2975_v51 = vld [vmem:[%s3976_s3 + $0x1e8] sm:$0xff]   ;;  %v2977_v54 = vld [vmem:[%s3976_s3 + $0x170] sm:$0xff]  }
 0x136   :  { %1906 = vmatprep.mubr.bf16.mxu0 %v828_v56  ;;  %v832_v1 = vpack.c.bf16 %v816_v63, %v816_v63  ;;  %v786_v2 = vrot.slane %v771_v49, 7  ;;  %v741_v5 = vrot.slane %v730_v43, 4  ;;  %v2521_v6 = vrot.slane %v731_v20, 11  ;;  %v2972_v49 = vld [vmem:[%s3976_s3 + $0x1a0] sm:$0xff]   ;;  %v2974_v52 = vld [vmem:[%s3976_s3 + $0x128] sm:$0xff]   ;;  %v2978_v56 = vld [vmem:[%s3976_s3 + $0x130] sm:$0xff]  }
 0x137   :  { %1907 = vmatmul.mubr.bf16.vlgmr.msra.gmra.mrb[8].mxu0 %v827_v60  ;;  %1946 = vmatprep.mubr.bf16.mxu1 %v830_v61  ;;  %v745_v7 = vrot.slane %v730_v43, 6  ;;  %v2523_v8 = vrot.slane %v731_v20, 13  ;;  %v750_v11 = vrot.slane %v3537_v44, 1  ;;  %v754_v12 = vrot.slane %v3537_v44, 3  ;;  %v2976_v53 = vld [vmem:[%s3976_s3 + $0x1a8] sm:$0xff]   ;;  %v2980_v57 = vld [vmem:[%s3976_s3 + $0x1b0] sm:$0xff]  }
 0x138   :  { %2722 = vmatpush3.bf16.msra.mxu0 %v2954_v59  ;;  %1947 = vmatmul.mubr.bf16.vlgmr.msra.gmra.mrb[8].mxu1 %v829_v62  ;;  %v818_v13 = vsel %vm810_vm2, %v747_v55, %v786_v2  ;;  %v3565_v15 = vsel %vm810_vm2, %v741_v5, %v2521_v6  ;;  %v2526_v16 = vrot.slane %v3539_v48, 10  ;;  %v779_v17 = vrot.slane %v3539_v48, 7  ;;  %v2979_v55 = vld [vmem:[%s3976_s3 + $0x1f0] sm:$0xff]   ;;  %v2981_v58 = vld [vmem:[%s3976_s3 + $0x178] sm:$0xff]   ;;  %v2985_v61 = vld [vmem:[%s3976_s3 + $0x240] sm:$0xff]  }
 0x139   :  { %1986 = vmatprep.mubr.bf16.mxu0 %v832_v1  ;;  %2744 = vmatpush3.bf16.msra.mxu1 %v2956_v0  ;;  %v834_v18 = vpack.c.bf16 %v818_v13, %v818_v13  ;;  %v3576_v23 = vsel %vm810_vm2, %v745_v7, %v2523_v8  ;;  %v752_v24 = vrot.slane %v3537_v44, 2  ;;  %v3584_v26 = vsel %vm810_vm2, %v750_v11, %v3539_v48  ;;  %v2983_v59 = vld [vmem:[%s3976_s3 + $0x1f8] sm:$0xff]   ;;  %v2987_v62 = vld [vmem:[%s3976_s3 + $0x2c0] sm:$0xff]   ;;  %v2991_v5 = vld [vmem:[%s3976_s3 + $0x2c8] sm:$0xff]  }
 0x13a   :  { %2723 = vmatprep.subr.bf16.mxu0 %v2957_v3  ;;  %2745 = vmatprep.subr.bf16.mxu1 %v2959_v4  ;;  %v3587_v27 = vsel %vm810_vm2, %v754_v12, %v2526_v16  ;;  %v2525_v28 = vrot.slane %v3539_v48, 9  ;;  %v3592_v29 = vsel %vm810_vm2, %v3537_v44, %v779_v17  ;;  %v758_v30 = vrot.slane %v3537_v44, 5  ;;  %v2982_v38 = vld [vmem:[%s3976_s3 + $0x138] sm:$0xff]   ;;  %v2986_v63 = vld [vmem:[%s3976_s3 + $0x200] sm:$0xff]   ;;  %v2989_v3 = vld [vmem:[%s3976_s3 + $0x248] sm:$0xff]  }
 0x13b   :  { %2026 = vmatprep.mubr.bf16.mxu1 %v834_v18  ;;  %v2528_v34 = vrot.slane %v3539_v48, 12  ;;  %v762_v37 = vrot.slane %v3537_v44, 7  ;;  %v793_v39 = vrot.slane %v779_v17, 7  ;;  %v756_v40 = vrot.slane %v3537_v44, 4  ;;  %v2984_v60 = vld [vmem:[%s3976_s3 + $0x1b8] sm:$0xff]   ;;  %v2988_v1 = vld [vmem:[%s3976_s3 + $0x280] sm:$0xff]  }
 0x13c   :  { %2724 = vmatpush3.bf16.msra.mxu0 %v2958_v14  ;;  %v3599_v33 = vsel %vm810_vm2, %v752_v24, %v2525_v28  ;;  %v2527_v41 = vrot.slane %v3539_v48, 11  ;;  %v760_v10 = vrot.slane %v3537_v44, 6  ;;  %v2529_v43 = vrot.slane %v3539_v48, 13  ;;  %v2968_v44 = vld [vmem:[%s3976_s3 + $0x198] sm:$0xff]   ;;  %v2970_v48 = vld [vmem:[%s3976_s3 + $0x120] sm:$0xff]   ;;  %v2990_v7 = vld [vmem:[%s3976_s3 + $0x208] sm:$0xff]  }
 0x13d   :  { %2746 = vmatpush3.bf16.msra.mxu1 %v2960_v21  ;;  %2725 = vmatprep.subr.bf16.mxu0 %v2961_v22  ;;  %v3615_v9 = vsel %vm810_vm2, %v758_v30, %v2528_v34  ;;  %v3620_v19 = vsel %vm810_vm2, %v762_v37, %v793_v39  ;;  %v831_v0 = vpack.c.bf16 %v3565_v15, %v3565_v15  ;;  %v2992_v8 = vld [vmem:[%s3976_s3 + $0x288] sm:$0xff]   ;;  %v2993_v11 = vld [vmem:[%s3976_s3 + $0x250] sm:$0xff]   ;;  %v2997_v15 = vld [vmem:[%s3976_s3 + $0x258] sm:$0xff]  }
 0x13e   :  { %2747 = vmatprep.subr.bf16.mxu1 %v2963_v25  ;;  %v3623_v20 = vsel %vm810_vm2, %v756_v40, %v2527_v41  ;;  %v3629_v45 = vsel %vm810_vm2, %v760_v10, %v2529_v43  ;;  %v833_v2 = vpack.c.bf16 %v3576_v23, %v3576_v23  ;;  %v836_v4 = vpack.c.bf16 %v3584_v26, %v3584_v26  ;;  %v2995_v12 = vld [vmem:[%s3976_s3 + $0x2d0] sm:$0xff]   ;;  %v2999_v16 = vld [vmem:[%s3976_s3 + $0x2d8] sm:$0xff]   ;;  %v3001_v21 = vld [vmem:[%s3976_s3 + $0x260] sm:$0xff]  }
 0x13f   :  { %v838_v6 = vpack.c.bf16 %v3587_v27, %v3587_v27  ;;  %v2994_v13 = vld [vmem:[%s3976_s3 + $0x210] sm:$0xff]   ;;  %v2998_v17 = vld [vmem:[%s3976_s3 + $0x218] sm:$0xff]   ;;  %v3003_v22 = vld [vmem:[%s3976_s3 + $0x2e0] sm:$0xff]   ;;  %v835_v43 = vpack.c.bf16 %v3592_v29, %v3592_v29 }
 0x140   :  { %2726 = vmatpush3.bf16.msra.mxu0 %v2962_v31  ;;  %v2996_v14 = vld [vmem:[%s3976_s3 + $0x290] sm:$0xff]   ;;  %v3000_v18 = vld [vmem:[%s3976_s3 + $0x298] sm:$0xff]   ;;  %v3002_v23 = vld [vmem:[%s3976_s3 + $0x220] sm:$0xff]  }
 0x141   :  { %2748 = vmatpush3.bf16.msra.mxu1 %v2964_v35  ;;  %2727 = vmatprep.subr.bf16.mxu0 %v2965_v36  ;;  %v3004_v24 = vld [vmem:[%s3976_s3 + $0x2a0] sm:$0xff]   ;;  %v3005_v25 = vld [vmem:[%s3976_s3 + $0x268] sm:$0xff]   ;;  %v3009_v30 = vld [vmem:[%s3976_s3 + $0x270] sm:$0xff]  }
 0x142   :  { %2749 = vmatprep.subr.bf16.mxu1 %v2967_v42  ;;  %v3007_v26 = vld [vmem:[%s3976_s3 + $0x2e8] sm:$0xff]   ;;  %v3011_v31 = vld [vmem:[%s3976_s3 + $0x2f0] sm:$0xff]   ;;  %v3013_v36 = vld [vmem:[%s3976_s3 + $0x278] sm:$0xff]  }
 0x143   :  { %v3006_v27 = vld [vmem:[%s3976_s3 + $0x228] sm:$0xff]   ;;  %v3010_v34 = vld [vmem:[%s3976_s3 + $0x230] sm:$0xff]   ;;  %v3015_v37 = vld [vmem:[%s3976_s3 + $0x2f8] sm:$0xff]  }
 0x144   :  { %2728 = vmatpush3.bf16.msra.mxu0 %v2966_v32  ;;  %v3008_v28 = vld [vmem:[%s3976_s3 + $0x2a8] sm:$0xff]   ;;  %v3012_v35 = vld [vmem:[%s3976_s3 + $0x2b0] sm:$0xff]   ;;  %v3014_v39 = vld [vmem:[%s3976_s3 + $0x238] sm:$0xff]  }
 0x145   :  { %2750 = vmatpush3.bf16.msra.mxu1 %v2968_v44  ;;  %2729 = vmatprep.subr.bf16.mxu0 %v2969_v46  ;;  %v3016_v40 = vld [vmem:[%s3976_s3 + $0x2b8] sm:$0xff]   ;;  %v3017_v41 = vld [vmem:[%s3976_s3 + $0x340] sm:$0xff]   ;;  %v837_v44 = vpack.c.bf16 %v3599_v33, %v3599_v33  ;;  %v3021_v46 = vld [vmem:[%s3976_s3 + $0x348] sm:$0xff]  }
 0x146   :  { %2751 = vmatprep.subr.bf16.mxu1 %v2971_v47  ;;  %v3019_v42 = vld [vmem:[%s3976_s3 + $0x3c0] sm:$0xff]   ;;  %v840_v47 = vpack.c.bf16 %v3615_v9, %v3615_v9  ;;  %v3023_v29 = vld [vmem:[%s3976_s3 + $0x3c8] sm:$0xff]   ;;  %v3025_v9 = vld [vmem:[%s3976_s3 + $0x350] sm:$0xff]  }
 0x147   :  { %v3018_v10 = vld [vmem:[%s3976_s3 + $0x300] sm:$0xff]   ;;  %v3022_v33 = vld [vmem:[%s3976_s3 + $0x308] sm:$0xff]  }
 0x148   :  { %2730 = vmatpush3.bf16.msra.mxu0 %v2970_v48  ;;  %v3020_v32 = vld [vmem:[%s3976_s3 + $0x380] sm:$0xff]   ;;  %v842_v48 = vpack.c.bf16 %v3620_v19, %v3620_v19  ;;  %v3027_v19 = vld [vmem:[%s3976_s3 + $0x3d0] sm:$0xff]  }
 0x149   :  { %2752 = vmatpush3.bf16.msra.mxu1 %v2972_v49  ;;  %2731 = vmatprep.subr.bf16.mxu0 %v2973_v50  ;;  %v3024_v49 = vld [vmem:[%s3976_s3 + $0x388] sm:$0xff]   ;;  %v3026_v50 = vld [vmem:[%s3976_s3 + $0x310] sm:$0xff]  }
 0x14a   :  { %2753 = vmatprep.subr.bf16.mxu1 %v2975_v51  ;;  %v3028_v51 = vld [vmem:[%s3976_s3 + $0x390] sm:$0xff]  }
 0x14c   :  { %2732 = vmatpush3.bf16.msra.mxu0 %v2974_v52  ;;  %v3029_v52 = vld [vmem:[%s3976_s3 + $0x358] sm:$0xff]  }
 0x14d   :  { %2754 = vmatpush3.bf16.msra.mxu1 %v2976_v53  ;;  %2733 = vmatprep.subr.bf16.mxu0 %v2977_v54  ;;  %v3031_v53 = vld [vmem:[%s3976_s3 + $0x3d8] sm:$0xff]  }
 0x14e   :  { %2755 = vmatprep.subr.bf16.mxu1 %v2979_v55  ;;  %v3030_v54 = vld [vmem:[%s3976_s3 + $0x318] sm:$0xff]  }
 0x14f   :  { %v3032_v55 = vld [vmem:[%s3976_s3 + $0x398] sm:$0xff]  }
 0x150   :  { %2734 = vmatpush3.bf16.msra.mxu0 %v2978_v56  ;;  %v3033_v56 = vld [vmem:[%s3976_s3 + $0x360] sm:$0xff]  }
 0x151   :  { %2756 = vmatpush3.bf16.msra.mxu1 %v2980_v57  ;;  %2735 = vmatprep.subr.bf16.mxu0 %v2981_v58  ;;  %v3035_v57 = vld [vmem:[%s3976_s3 + $0x3e0] sm:$0xff]  }
 0x152   :  { %2757 = vmatprep.subr.bf16.mxu1 %v2983_v59  ;;  %v3034_v58 = vld [vmem:[%s3976_s3 + $0x320] sm:$0xff]  }
 0x153   :  { %v3036_v59 = vld [vmem:[%s3976_s3 + $0x3a0] sm:$0xff]  }
 0x154   :  { %2736 = vmatpush3.bf16.msra.mxu0 %v2982_v38  ;;  %v3037_v38 = vld [vmem:[%s3976_s3 + $0x368] sm:$0xff]  }
 0x155   :  { %2758 = vmatpush3.bf16.msra.mxu1 %v2984_v60  ;;  %2765 = vmatprep.subr.bf16.mxu0 %v2985_v61  ;;  %v3039_v60 = vld [vmem:[%s3976_s3 + $0x3e8] sm:$0xff]  }
 0x156   :  { %2787 = vmatprep.subr.bf16.mxu1 %v2987_v62  ;;  %v3038_v61 = vld [vmem:[%s3976_s3 + $0x328] sm:$0xff]  }
 0x157   :  { %1987 = vmatmul.mubr.bf16.vlgmr.msra.gmra.mrb[12].mxu0 %v831_v0  ;;  %v3040_v62 = vld [vmem:[%s3976_s3 + $0x3a8] sm:$0xff]   ;;  %v3043_v0 = vld [vmem:[%s3976_s3 + $0x3f0] sm:$0xff]  }
 0x158   :  { %2027 = vmatmul.mubr.bf16.vlgmr.msra.gmra.mrb[12].mxu1 %v833_v2  ;;  %2766 = vmatpush3.bf16.msra.mxu0 %v2986_v63  ;;  %v3041_v63 = vld [vmem:[%s3976_s3 + $0x370] sm:$0xff]  }
 0x159   :  { %2066 = vmatprep.mubr.bf16.mxu0 %v836_v4  ;;  %2788 = vmatpush3.bf16.msra.mxu1 %v2988_v1  ;;  %v3042_v1 = vld [vmem:[%s3976_s3 + $0x330] sm:$0xff]   ;;  %v3047_v4 = vld [vmem:[%s3976_s3 + $0x3f8] sm:$0xff]  }
 0x15a   :  { %2106 = vmatprep.mubr.bf16.mxu1 %v838_v6  ;;  %2767 = vmatprep.subr.bf16.mxu0 %v2989_v3  ;;  %v3044_v2 = vld [vmem:[%s3976_s3 + $0x3b0] sm:$0xff]   ;;  %v3045_v3 = vld [vmem:[%s3976_s3 + $0x378] sm:$0xff]  }
 0x15b   :  { %2789 = vmatprep.subr.bf16.mxu1 %v2991_v5  ;;  %v3046_v5 = vld [vmem:[%s3976_s3 + $0x338] sm:$0xff]  }
 0x15c   :  { %2768 = vmatpush3.bf16.msra.mxu0 %v2990_v7  ;;  %v3048_v6 = vld [vmem:[%s3976_s3 + $0x3b8] sm:$0xff]   ;;  %v839_v7 = vpack.c.bf16 %v3623_v20, %v3623_v20  ;;  %v3051_v20 = vld [vmem:[%s3978_s5 + $0x10] sm:$0xff]  }
 0x15d   :  { %2790 = vmatpush3.bf16.msra.mxu1 %v2992_v8  ;;  %2769 = vmatprep.subr.bf16.mxu0 %v2993_v11  ;;  %v841_v8 = vpack.c.bf16 %v3629_v45, %v3629_v45  ;;  %v3049_v11 = vld [vmem:[%s3978_s5] sm:$0xff]   ;;  %v3052_v45 = vld [vmem:[%s3978_s5 + $0x18] sm:$0xff]  }
 0x15e   :  { %2791 = vmatprep.subr.bf16.mxu1 %v2995_v12  ;;  %v3088_v12 = vmov 0.0  }
 0x160   :  { %2770 = vmatpush3.bf16.msra.mxu0 %v2994_v13  ;;  %v3050_v13 = vld [vmem:[%s3978_s5 + $0x8] sm:$0xff]  }
 0x161   :  { %2792 = vmatpush3.bf16.msra.mxu1 %v2996_v14  ;;  %2771 = vmatprep.subr.bf16.mxu0 %v2997_v15  ;;  %v3053_v14 = vld [vmem:[%s3978_s5 + $0x20] sm:$0xff]   ;;  %v3054_v15 = vld [vmem:[%s3978_s5 + $0x28] sm:$0xff]  }
 0x162   :  { %2793 = vmatprep.subr.bf16.mxu1 %v2999_v16  ;;  %v3055_v16 = vld [vmem:[%s3978_s5 + $0x30] sm:$0xff]  }
 0x164   :  { %2772 = vmatpush3.bf16.msra.mxu0 %v2998_v17  ;;  %v3056_v17 = vld [vmem:[%s3978_s5 + $0x38] ss:$0 sps:$4 sm:$0xff]  }
 0x165   :  { %2794 = vmatpush3.bf16.msra.mxu1 %v3000_v18  ;;  %2773 = vmatprep.subr.bf16.mxu0 %v3001_v21  ;;  %v3057_v18 = vld [vmem:[%s3980_s7] sm:$0xff]   ;;  %v2269_v21 = vsel %vm2267_vm3, %v3056_v17, 0 }
 0x166   :  { %2795 = vmatprep.subr.bf16.mxu1 %v3003_v22  ;;  %v3058_v22 = vld [vmem:[%s3980_s7 + $0x8] sm:$0xff]  }
 0x168   :  { %2774 = vmatpush3.bf16.msra.mxu0 %v3002_v23  ;;  %v3059_v23 = vld [vmem:[%s3980_s7 + $0x10] sm:$0xff]  }
 0x169   :  { %2796 = vmatpush3.bf16.msra.mxu1 %v3004_v24  ;;  %2775 = vmatprep.subr.bf16.mxu0 %v3005_v25  ;;  %v3060_v24 = vld [vmem:[%s3980_s7 + $0x18] sm:$0xff]  }
 0x16a   :  { %2797 = vmatprep.subr.bf16.mxu1 %v3007_v26  ;;  %v2530_v26 = vld [vmem:[%s3977_s4] ss:$0 sm:$0xff] }
 0x16c   :  { %2776 = vmatpush3.bf16.msra.mxu0 %v3006_v27 }
 0x16d   :  { %2798 = vmatpush3.bf16.msra.mxu1 %v3008_v28  ;;  %2777 = vmatprep.subr.bf16.mxu0 %v3009_v30 }
 0x16e   :  { %2799 = vmatprep.subr.bf16.mxu1 %v3011_v31 }
 0x170   :  { %2778 = vmatpush3.bf16.msra.mxu0 %v3010_v34 }
 0x171   :  { %2800 = vmatpush3.bf16.msra.mxu1 %v3012_v35  ;;  %2779 = vmatprep.subr.bf16.mxu0 %v3013_v36 }
 0x172   :  { %2801 = vmatprep.subr.bf16.mxu1 %v3015_v37 }
 0x174   :  { %2780 = vmatpush3.bf16.msra.mxu0 %v3014_v39 }
 0x175   :  { %2802 = vmatpush3.bf16.msra.mxu1 %v3016_v40  ;;  %2809 = vmatprep.subr.bf16.mxu0 %v3017_v41 }
 0x176   :  { %2831 = vmatprep.subr.bf16.mxu1 %v3019_v42 }
 0x177   :  { %2067 = vmatmul.mubr.bf16.vlgmr.msra.gmra.mrb[16].mxu0 %v835_v43 }
 0x178   :  { %2107 = vmatmul.mubr.bf16.vlgmr.msra.gmra.mrb[16].mxu1 %v837_v44  ;;  %2810 = vmatpush3.bf16.msra.mxu0 %v3018_v10 }
 0x179   :  { %2146 = vmatprep.mubr.bf16.mxu0 %v840_v47  ;;  %2832 = vmatpush3.bf16.msra.mxu1 %v3020_v32 }
 0x17a   :  { %2186 = vmatprep.mubr.bf16.mxu1 %v842_v48  ;;  %2811 = vmatprep.subr.bf16.mxu0 %v3021_v46 }
 0x17b   :  { %2833 = vmatprep.subr.bf16.mxu1 %v3023_v29 }
 0x17c   :  { %2812 = vmatpush3.bf16.msra.mxu0 %v3022_v33 }
 0x17d   :  { %2834 = vmatpush3.bf16.msra.mxu1 %v3024_v49  ;;  %2813 = vmatprep.subr.bf16.mxu0 %v3025_v9 }
 0x17e   :  { %2835 = vmatprep.subr.bf16.mxu1 %v3027_v19 }
 0x180   :  { %2814 = vmatpush3.bf16.msra.mxu0 %v3026_v50 }
 0x181   :  { %2836 = vmatpush3.bf16.msra.mxu1 %v3028_v51  ;;  %2815 = vmatprep.subr.bf16.mxu0 %v3029_v52 }
 0x182   :  { %2837 = vmatprep.subr.bf16.mxu1 %v3031_v53 }
 0x184   :  { %2816 = vmatpush3.bf16.msra.mxu0 %v3030_v54 }
 0x185   :  { %2838 = vmatpush3.bf16.msra.mxu1 %v3032_v55  ;;  %2817 = vmatprep.subr.bf16.mxu0 %v3033_v56 }
 0x186   :  { %2839 = vmatprep.subr.bf16.mxu1 %v3035_v57 }
 0x188   :  { %2818 = vmatpush3.bf16.msra.mxu0 %v3034_v58 }
 0x189   :  { %2840 = vmatpush3.bf16.msra.mxu1 %v3036_v59  ;;  %2819 = vmatprep.subr.bf16.mxu0 %v3037_v38 }
 0x18a   :  { %2841 = vmatprep.subr.bf16.mxu1 %v3039_v60 }
 0x18c   :  { %2820 = vmatpush3.bf16.msra.mxu0 %v3038_v61 }
 0x18d   :  { %2842 = vmatpush3.bf16.msra.mxu1 %v3040_v62  ;;  %2821 = vmatprep.subr.bf16.mxu0 %v3041_v63 }
 0x18e   :  { %2843 = vmatprep.subr.bf16.mxu1 %v3043_v0 }
 0x190   :  { %2822 = vmatpush3.bf16.msra.mxu0 %v3042_v1 }
 0x191   :  { %2844 = vmatpush3.bf16.msra.mxu1 %v3044_v2  ;;  %2823 = vmatprep.subr.bf16.mxu0 %v3045_v3 }
 0x192   :  { %2845 = vmatprep.subr.bf16.mxu1 %v3047_v4 }
 0x194   :  { %2824 = vmatpush3.bf16.msra.mxu0 %v3046_v5 }
 0x195   :  { %2846 = vmatpush3.bf16.msra.mxu1 %v3048_v6  ;;  %2869 = vmatprep.subr.bf16.mxu0 %v3088_v12 }
 0x196   :  { %2889 = vmatprep.subr.bf16.mxu1 %v3088_v12 }
 0x197   :  { %2147 = vmatmul.mubr.bf16.vlgmr.msra.gmra.mrb[20].mxu0 %v839_v7 }
 0x198   :  { %2187 = vmatmul.mubr.bf16.vlgmr.msra.gmra.mrb[20].mxu1 %v841_v8  ;;  %2870 = vmatpush3.bf16.msra.mxu0 %v3049_v11 }
 0x199   :  { %2871 = vmatprep.subr.bf16.mxu0 %v3088_v12  ;;  %2885 = vmatprep.mubr.msk.bf16.mxu0 %vm3089_vm4, %v3088_v12 }
 0x19a   :  { %2901 = vmatprep.mubr.msk.bf16.mxu1 %vm3089_vm4, %v3088_v12  ;;  %2890 = vmatpush3.bf16.msra.mxu1 %v3057_v18 }
 0x19b   :  { %2891 = vmatprep.subr.bf16.mxu1 %v3088_v12 }
 0x19c   :  { %2872 = vmatpush3.bf16.msra.mxu0 %v3050_v13  ;;  %v3061_v13 = vld [vmem:[%s3980_s7 + $0x20] sm:$0xff]  }
 0x19d   :  { %2873 = vmatprep.subr.bf16.mxu0 %v3088_v12 }
 0x19e   :  { %2892 = vmatpush3.bf16.msra.mxu1 %v3058_v22 }
 0x19f   :  { %2893 = vmatprep.subr.bf16.mxu1 %v3088_v12 }
 0x1a0   :  { %2874 = vmatpush3.bf16.msra.mxu0 %v3051_v20  ;;  %v3062_v20 = vld [vmem:[%s3980_s7 + $0x28] ss:$0 sps:$4 sm:$0x33]  }
 0x1a1   :  { %2875 = vmatprep.subr.bf16.mxu0 %v3088_v12 }
 0x1a2   :  { %2894 = vmatpush3.bf16.msra.mxu1 %v3059_v23 }
 0x1a3   :  { %2895 = vmatprep.subr.bf16.mxu1 %v3088_v12 }
 0x1a4   :  { %2876 = vmatpush3.bf16.msra.mxu0 %v3052_v45  ;;  %v2370_v45 = vsel %vm2368_vm6, %v3062_v20, 0 }
 0x1a5   :  { %2877 = vmatprep.subr.bf16.mxu0 %v3088_v12 }
 0x1a6   :  { %2896 = vmatpush3.bf16.msra.mxu1 %v3060_v24  ;;  %v2669_v24 = vld [vmem:[%s3981_s8] ss:$0 sm:$0xff] }
 0x1a7   :  { %2897 = vmatprep.subr.bf16.mxu1 %v3088_v12 }
 0x1a8   :  { %2878 = vmatpush3.bf16.msra.mxu0 %v3053_v14  ;;  %v2659_v14 = vld [vmem:[%s3979_s6] ss:$0 sm:$0xff]  ;;  %s3063_s6 = scalar_lea.vmem %s2421_s13, 32 }
 0x1a9   :  { %2879 = vmatprep.subr.bf16.mxu0 %v3088_v12  ;;  %p3064_p0 = scmp.ne.s32.totalorder %s2421_s13, %s3063_s6  ;;  %p3069_p2 = scmp.lt.s32.totalorder %s3063_s6, %s3063_s6 }
 0x1aa   :  { %2898 = vmatpush3.bf16.msra.mxu1 %v3061_v13 }
 0x1ab   :  { %2899 = vmatprep.subr.bf16.mxu1 %v3088_v12  ;;  %p3070_p3 = por %p3069_p2, %p3068_p1 }
 0x1ac   :  { %2880 = vmatpush3.bf16.msra.mxu0 %v3054_v15 }
 0x1ad   :  { %2881 = vmatprep.subr.bf16.mxu0 %v3088_v12  ;;  %p3071_p4 = pnand %p3070_p3, %p3064_p0 }
 0x1ae   :  { %2900 = vmatpush3.bf16.msra.mxu1 %v2370_v45 }
 0x1b0   :  { %2882 = vmatpush3.bf16.msra.mxu0 %v3055_v16 }
 0x1b1   :  { %2883 = vmatprep.subr.bf16.mxu0 %v3088_v12 }
 0x1b4   :  { %2884 = vmatpush3.bf16.msra.mxu0 %v2269_v21 }
 0x20a   :  { %v2693_v25 = vpop.f32.mrb[8].mxu0 }
 0x20b   :  { %v2694_v27 = vpop.f32.mrb[9].mxu0  ;;  %v2715_v28 = vpop.f32.mrb[8].mxu1 }
 0x20c   :  { %v2695_v30 = vadd.f32 %v2694_v27, %v2693_v25  ;;  %v2696_v31 = vpop.f32.mrb[10].mxu0  ;;  %v2716_v34 = vpop.f32.mrb[9].mxu1 }
 0x20d   :  { %v2717_v35 = vadd.f32 %v2716_v34, %v2715_v28  ;;  %v2697_v36 = vpop.f32.mrb[11].mxu0  ;;  %v2718_v37 = vpop.f32.mrb[10].mxu1 }
 0x20e   :  { %v1909_v39 = vadd.f32 %v2695_v30, %v2530_v26  ;;  %v2719_v40 = vpop.f32.mrb[11].mxu1 }
 0x210   :  { %v1949_v41 = vadd.f32 %v2717_v35, %v1909_v39 }
 0x22a   :  { %v2737_v42 = vpop.f32.mrb[12].mxu0 }
 0x22b   :  { %v2738_v10 = vpop.f32.mrb[13].mxu0  ;;  %v2759_v43 = vpop.f32.mrb[12].mxu1 }
 0x22c   :  { %v2739_v32 = vadd.f32 %v2738_v10, %v2737_v42  ;;  %v2740_v44 = vpop.f32.mrb[14].mxu0  ;;  %v2760_v46 = vpop.f32.mrb[13].mxu1 }
 0x22d   :  { %v2761_v47 = vadd.f32 %v2760_v46, %v2759_v43  ;;  %v2741_v29 = vpop.f32.mrb[15].mxu0  ;;  %v2762_v48 = vpop.f32.mrb[14].mxu1 }
 0x22e   :  { %v1989_v33 = vadd.f32 %v2739_v32, %v1949_v41  ;;  %v2763_v49 = vpop.f32.mrb[15].mxu1 }
 0x230   :  { %v2029_v9 = vadd.f32 %v2761_v47, %v1989_v33 }
 0x24a   :  { %v2781_v19 = vpop.f32.mrb[16].mxu0 }
 0x24b   :  { %v2782_v50 = vpop.f32.mrb[17].mxu0  ;;  %v2803_v51 = vpop.f32.mrb[16].mxu1 }
 0x24c   :  { %v2783_v52 = vadd.f32 %v2782_v50, %v2781_v19  ;;  %v2784_v53 = vpop.f32.mrb[18].mxu0  ;;  %v2804_v54 = vpop.f32.mrb[17].mxu1 }
 0x24d   :  { %v2805_v55 = vadd.f32 %v2804_v54, %v2803_v51  ;;  %v2785_v56 = vpop.f32.mrb[19].mxu0  ;;  %v2806_v57 = vpop.f32.mrb[18].mxu1 }
 0x24e   :  { %v2069_v58 = vadd.f32 %v2783_v52, %v2029_v9  ;;  %v2807_v59 = vpop.f32.mrb[19].mxu1 }
 0x250   :  { %v2109_v38 = vadd.f32 %v2805_v55, %v2069_v58 }
 0x26a   :  { %v2825_v60 = vpop.f32.mrb[20].mxu0 }
 0x26b   :  { %v2826_v61 = vpop.f32.mrb[21].mxu0  ;;  %v2847_v62 = vpop.f32.mrb[20].mxu1 }
 0x26c   :  { %v2827_v63 = vadd.f32 %v2826_v61, %v2825_v60  ;;  %v2828_v0 = vpop.f32.mrb[22].mxu0  ;;  %v2848_v1 = vpop.f32.mrb[21].mxu1 }
 0x26d   :  { %v2849_v2 = vadd.f32 %v2848_v1, %v2847_v62  ;;  %v2829_v3 = vpop.f32.mrb[23].mxu0  ;;  %v2850_v4 = vpop.f32.mrb[22].mxu1 }
 0x26e   :  { %v2149_v5 = vadd.f32 %v2827_v63, %v2109_v38  ;;  %v2851_v6 = vpop.f32.mrb[23].mxu1 }
 0x270   :  { %v2189_v7 = vadd.f32 %v2849_v2, %v2149_v5 }
 0x272   :  { %v2194_v8 = vmax.f32 %v2189_v7, 0.0 }
 0x274   :  { %v2195_v11 = vpack.c.bf16 %v2194_v8, %v2194_v8 }
 0x276   :  { %2886 = vmatmul.mubr.msk.bf16.vlgmr.msra.gmra.mrb[24].mxu0 %vm2263_vm5, %v2195_v11 }
 0x349   :  { %v2305_v15 = vpop.f32.mrb[24].mxu0 }
 0x34a   :  { %v2306_v16 = vadd.f32 %v2659_v14, %v2305_v15  ;;  %v2887_v17 = vpop.f32.mrb[25].mxu0 }
 0x34b   :  { %v2308_v18 = vpop.f32.mrb[26].mxu0 }
 0x34c   :  { %v2311_v21 = vmax.f32 %v2306_v16, 0.0  ;;  %v2888_v22 = vpop.f32.mrb[27].mxu0 }
 0x34e   :  { %v2312_v23 = vpack.c.bf16 %v2311_v21, %v2311_v21 }
 0x350   :  { %2902 = vmatmul.mubr.msk.bf16.vlgmr.msra.gmra.mrb[24].mxu1 %vm2364_vm7, %v2312_v23 }
 0x423   :  { %v2406_v12 = vpop.f32.mrb[24].mxu1 }
 0x424   :  { %v2407_v25 = vadd.f32 %v2669_v24, %v2406_v12  ;;  %v2903_v26 = vpop.f32.mrb[25].mxu1 }
 0x425   :  { %v2409_v27 = vpop.f32.mrb[26].mxu1 }
 0x426   :  { %v2904_v28 = vpop.f32.mrb[27].mxu1  ;;  %2413 = vst.msk [vmem:[#allocation2] sm:$0x3] %vm2412_vm8, %v2407_v25 }
 0x427   :  { %3074 = shalt.err (!%p3071_p4)
}
 0x428   :  { %s3075_s8 = scalar_lea.hbm %s3982_s9, 32 }
 0x429   :  { %p3076_p5 = scmp.ne.s32.totalorder %s3982_s9, %s3075_s8  ;;  %p3079_p6 = scmp.lt.u32.totalorder %s3075_s8, %s3982_s9 }
 0x42b   :  { %p3081_p7 = pnand %p3079_p6, %p3076_p5 }
 0x42d   :  { %3084 = shalt.err (!%p3081_p7)
}
 0x42e   :  { %2423 = dma.vmem_to_hbm [thread:$0]  %s2421_s13, 32, %s3982_s9, [#allocation3]  }
 0x42f   :  { %3085 = dma.done.wait [#allocation3], 32  }
 0x430   :  { %3086 = vsyncadd [#allocation3], 4294967264 }
 0x431   :  { %2427 = vsyncpa [#allocation3], 1 }

</bundles_post_ra>
